<compile_context>
chip_gen: v7x
topology: tpu7x:2x2x1
jax: 0.10.0
libtpu: 0.0.40
codegen_flags: <defaults>
</compile_context>

<pallas_src>
import jax
import jax.numpy as jnp
import numpy as np
from jax.experimental import pallas as pl
from jax.experimental.pallas import tpu as pltpu

# ----------------------------- configuration --------------------------------
H_DIM = 32          # h_dim
NUM_HEADS = 3       # num_heads of both GATConv layers
SEQ_LEN = 4         # seq_len
NUM_NODES = 20      # global embedding table size (num_nodes)
N_PER_GRAPH = 8     # nodes per snapshot graph (uniform; ragged graphs would need a mask path)
NUM_TIMES = 8       # number of entries in graph_dict (times = 0..7, time_unit = 1)
DROPOUT_P = 0.2     # TODO(synk): nn.Dropout is applied in eval mode (identity); train-time mask omitted.


# ------------------------------- Pallas kernel -------------------------------
def _gat_aggregator_kernel(x_ref, adj_ref, w_ref, wlr_ref, b_ref, out_ref):
    """Two GATConv layers (mean over heads) + per-graph max pooling.

    x_ref   : (N, D)        node features
    adj_ref : (N, N)        adj[dst, src] = 1 for edge src -> dst (block diagonal)
    w_ref   : (2*H, D, D)   per-layer, per-head fc weights
    wlr_ref : (4, D, H)     folded attention projections [wl1, wr1, wl2, wr2]
    b_ref   : (2, 1, D)     per-layer mean-over-heads GATConv bias
    out_ref : (T, D)        per-graph max-pooled output
    """
    adj = adj_ref[...]                       # (N, N)
    edge_mask = adj > 0.0
    h0 = x_ref[...]                          # (N, D)

    def gat_layer(h, layer):
        # Folded attention projections: el/er directly from matmuls (no XLU reductions).
        wl = wlr_ref[2 * layer + 0]          # (D, H)
        wr = wlr_ref[2 * layer + 1]          # (D, H)
        el = jnp.dot(h, wl, preferred_element_type=jnp.float32)   # (N, H) src terms
        er = jnp.dot(h, wr, preferred_element_type=jnp.float32)   # (N, H) dst terms
        elT = jnp.transpose(el)              # (H, N) — single small transpose per layer

        acc = jnp.zeros((h.shape[0], H_DIM), dtype=jnp.float32)
        for hd in range(NUM_HEADS):
            # Per-head fc: tile-aligned (D, D) weight, no lane slicing of a wide feat block.
            fh = jnp.dot(h, w_ref[layer * NUM_HEADS + hd],
                         preferred_element_type=jnp.float32)      # (N, D)
            # e[i, j] = leaky_relu(er[dst=i] + el[src=j]), slope 0.2
            e = er[:, hd:hd + 1] + elT[hd:hd + 1, :]               # (N, N)
            e = jnp.where(e > 0, e, 0.2 * e)
            # edge_softmax over incoming edges of each destination node.
            # (Every node has a self-loop, so each row has >= 1 edge — matches DGL's
            #  allow_zero_in_degree=False requirement.)
            e = jnp.where(edge_mask, e, jnp.float32(-1e30))
            e = e - jnp.max(e, axis=-1, keepdims=True)
            p = jnp.exp(e)
            alpha = p * pl.reciprocal(jnp.sum(p, axis=-1, keepdims=True), approx=True)
            # aggregate neighbours: (N, N) @ (N, D) -> (N, D); heads summed here.
            acc = acc + jnp.dot(alpha, fh, preferred_element_type=jnp.float32)
        # .mean(dim=1) over heads; per-head biases pre-averaged on host.
        return acc * jnp.float32(1.0 / NUM_HEADS) + b_ref[layer]

    h1 = gat_layer(h0, 0)
    h2 = gat_layer(h1, 1)

    # dgl.max_nodes: graphs are contiguous N_PER_GRAPH-node blocks -> reshape + max.
    num_graphs = out_ref.shape[0]
    out_ref[...] = jnp.max(h2.reshape(num_graphs, N_PER_GRAPH, H_DIM), axis=1)
    # TODO(synk): output is (T, 32)-wide (masked vst); a lane-dense (1, T*D) store would
    # need an in-kernel relayout that is not worth it at this output size.


def _full_spec(shape):
    nd = len(shape)
    return pl.BlockSpec(shape, lambda i, _nd=nd: (0,) * _nd)


def gat_aggregate_global(x, adj, w_all, wlr_all, b_all, num_graphs):
    """Runs the Pallas kernel: returns global_info of shape (num_graphs, h_dim)."""
    N, D = x.shape
    assert N == num_graphs * N_PER_GRAPH
    inputs = [x, adj, w_all, wlr_all, b_all]
    return pl.pallas_call(
        _gat_aggregator_kernel,
        out_shape=jax.ShapeDtypeStruct((num_graphs, D), jnp.float32),
        grid=(1,),
        in_specs=[_full_spec(a.shape) for a in inputs],
        out_specs=_full_spec((num_graphs, D)),
        compiler_params=pltpu.CompilerParams(
            dimension_semantics=("arbitrary",)),
    )(*inputs)


# ---------------------------- parameter packing -------------------------------
def pack_params(params):
    """Fold attention vectors into the fc weights and pack into 3 arrays."""
    def fold(w, al, ar):
        # w: (D_in, H*D_out) with per-head column blocks; al/ar: (H, D_out)
        w3 = w.reshape(H_DIM, NUM_HEADS, H_DIM)                    # (D_in, H, D_out)
        wl = jnp.einsum('dhk,hk->dh', w3, al)                      # (D_in, H)
        wr = jnp.einsum('dhk,hk->dh', w3, ar)                      # (D_in, H)
        w_heads = jnp.transpose(w3, (1, 0, 2))                     # (H, D_in, D_out)
        return w_heads, wl, wr

    w1h, wl1, wr1 = fold(params["w1"], params["attn_l1"], params["attn_r1"])
    w2h, wl2, wr2 = fold(params["w2"], params["attn_l2"], params["attn_r2"])
    w_all = jnp.concatenate([w1h, w2h], axis=0).astype(jnp.float32)      # (2H, D, D)
    wlr_all = jnp.stack([wl1, wr1, wl2, wr2], axis=0).astype(jnp.float32)  # (4, D, H)
    b_all = jnp.stack([params["b1"].mean(axis=0, keepdims=True),
                       params["b2"].mean(axis=0, keepdims=True)],
                      axis=0).astype(jnp.float32)                        # (2, 1, D)
    return w_all, wlr_all, b_all


# ------------------------------ host-side glue --------------------------------
def build_graph(t):
    """Deterministic synthetic snapshot graph for time t."""
    ids = (t * 3 + np.arange(N_PER_GRAPH)) % NUM_NODES            # node 'id' field
    adj = np.zeros((N_PER_GRAPH, N_PER_GRAPH), np.float32)        # adj[dst, src]
    for j in range(N_PER_GRAPH):
        adj[j, j] = 1.0                                           # self loop (in-degree >= 1)
        adj[(j + 1) % N_PER_GRAPH, j] = 1.0
        adj[(j + 3) % N_PER_GRAPH, j] = 1.0
    return ids, adj


def forward(t_list, embed_weight, graph_dict, packed_params):
    """Mirrors GATAggregator_global.forward (graph bookkeeping in Python, GAT in Pallas)."""
    w_all, wlr_all, b_all = packed_params
    times = sorted(graph_dict.keys())
    time_unit = times[1] - times[0]

    # truncate to the non-zero prefix of t_list
    t_arr = np.asarray(t_list)
    num_non_zero = int(np.count_nonzero(t_arr))
    t_arr = t_arr[:num_non_zero]

    time_list, len_non_zero = [], []
    for tim in t_arr:
        length = int(tim // time_unit)
        if SEQ_LEN <= length:
            time_list.append(list(times[length - SEQ_LEN:length]))
            len_non_zero.append(SEQ_LEN)
        else:
            time_list.append(list(times[:length]))
            len_non_zero.append(length)

    unique_t = sorted(set(t for tl in time_list for t in tl))
    time_to_idx = {t: i for i, t in enumerate(unique_t)}

    # ---- dgl.batch equivalent: block-diagonal adjacency (graphs are contiguous 8-node blocks)
    all_ids, adj_blocks = [], []
    for t in unique_t:
        ids, adj = graph_dict[t]
        all_ids.append(ids)
        adj_blocks.append(adj)
    T = len(unique_t)
    N = T * N_PER_GRAPH
    big_adj = np.zeros((N, N), np.float32)
    for g in range(T):
        s = g * N_PER_GRAPH
        big_adj[s:s + N_PER_GRAPH, s:s + N_PER_GRAPH] = adj_blocks[g]
    node_ids = np.concatenate(all_ids)

    # embedding lookup (glue): global_embeds.weight[batched_graph.ndata['id']]
    x = embed_weight[jnp.asarray(node_ids)]                       # (N, h_dim)

    # ---- hot path in the Pallas kernel
    global_info = gat_aggregate_global(
        x.astype(jnp.float32),
        jnp.asarray(big_adj),
        w_all, wlr_all, b_all,
        T)                                                        # (T, h_dim)
    global_info = np.asarray(jax.block_until_ready(global_info))

    # ---- embed_seq_tensor assembly + dropout(eval) + pack_padded_sequence
    B = len(len_non_zero)
    embed_seq = np.zeros((B, SEQ_LEN, H_DIM), np.float32)
    for i, tl in enumerate(time_list):
        for j, t in enumerate(tl):
            embed_seq[i, j, :] = global_info[time_to_idx[t]]
    # dropout: identity (eval mode)

    # pack_padded_sequence(batch_first=True) equivalent
    max_len = max(len_non_zero)
    batch_sizes = [int(sum(1 for L in len_non_zero if L > j)) for j in range(max_len)]
    packed_rows = []
    for j in range(max_len):
        for i in range(B):
            if len_non_zero[i] > j:
                packed_rows.append(embed_seq[i, j])
    packed_data = np.stack(packed_rows, axis=0)                   # (sum(lengths), h_dim)
    return packed_data, np.array(batch_sizes, np.int64), global_info


# ---------------------------------- main --------------------------------------
if __name__ == "__main__":
    key = jax.random.PRNGKey(0)
    k_embed, k_w1, k_al1, k_ar1, k_w2, k_al2, k_ar2 = jax.random.split(key, 7)

    # deterministic parameters (shapes per GATConv(h_dim, h_dim, num_heads))
    params = {
        "w1": 0.1 * jax.random.normal(k_w1, (H_DIM, NUM_HEADS * H_DIM), jnp.float32),
        "attn_l1": 0.1 * jax.random.normal(k_al1, (NUM_HEADS, H_DIM), jnp.float32),
        "attn_r1": 0.1 * jax.random.normal(k_ar1, (NUM_HEADS, H_DIM), jnp.float32),
        "b1": jnp.zeros((NUM_HEADS, H_DIM), jnp.float32),
        "w2": 0.1 * jax.random.normal(k_w2, (H_DIM, NUM_HEADS * H_DIM), jnp.float32),
        "attn_l2": 0.1 * jax.random.normal(k_al2, (NUM_HEADS, H_DIM), jnp.float32),
        "attn_r2": 0.1 * jax.random.normal(k_ar2, (NUM_HEADS, H_DIM), jnp.float32),
        "b2": jnp.zeros((NUM_HEADS, H_DIM), jnp.float32),
    }
    packed_params = pack_params(params)

    # global node-embedding table (nn.Embedding weight)
    embed_weight = jax.random.normal(k_embed, (NUM_NODES, H_DIM), jnp.float32)

    # synthetic graph_dict: time -> (node ids, adjacency)
    graph_dict = {t: build_graph(t) for t in range(NUM_TIMES)}

    # query times (non-zero prefix, lengths come out sorted descending for packing)
    t_list = [6, 5, 3, 0]

    packed_data, batch_sizes, global_info = forward(t_list, embed_weight, graph_dict, packed_params)

    assert packed_data.shape[1] == H_DIM
    assert np.isfinite(packed_data).all()
    assert np.isfinite(global_info).all()
    print("KERNEL_OK")
</pallas_src>

<mosaic_0001>
module attributes {stable_mosaic.version = 11 : i64} {
  func.func @_gat_aggregator_kernel(%arg0: i32, %arg1: memref<48x32xf32, #tpu.memory_space<vmem>>, %arg2: memref<48x48xf32, #tpu.memory_space<vmem>>, %arg3: memref<6x32x32xf32, #tpu.memory_space<vmem>>, %arg4: memref<4x32x3xf32, #tpu.memory_space<vmem>>, %arg5: memref<2x1x32xf32, #tpu.memory_space<vmem>>, %arg6: memref<6x32xf32, #tpu.memory_space<vmem>>) attributes {dimension_semantics = [#tpu.dimension_semantics<arbitrary>], iteration_bounds = array<i64: 1>, scalar_prefetch = 0 : i64, scratch_operands = 0 : i64, tpu.core_type = #tpu.core_type<tc>, window_params = [{pipeline_mode = #tpu.pipeline_mode<synchronous>, transform_indices = @transform_0, window_bounds = array<i64: 48, 32>}, {pipeline_mode = #tpu.pipeline_mode<synchronous>, transform_indices = @transform_1, window_bounds = array<i64: 48, 48>}, {pipeline_mode = #tpu.pipeline_mode<synchronous>, transform_indices = @transform_2, window_bounds = array<i64: 6, 32, 32>}, {pipeline_mode = #tpu.pipeline_mode<synchronous>, transform_indices = @transform_3, window_bounds = array<i64: 4, 32, 3>}, {pipeline_mode = #tpu.pipeline_mode<synchronous>, transform_indices = @transform_4, window_bounds = array<i64: 2, 1, 32>}, {pipeline_mode = #tpu.pipeline_mode<synchronous>, transform_indices = @transform_5, window_bounds = array<i64: 6, 32>}]} {
    %c0 = arith.constant 0 : index
    %c0_0 = arith.constant 0 : index
    %0 = vector.load %arg2[%c0, %c0_0] : memref<48x48xf32, #tpu.memory_space<vmem>>, vector<48x48xf32>
    %cst = arith.constant 0.000000e+00 : f32
    %1 = vector.broadcast %cst : f32 to vector<48x48xf32>
    %2 = arith.cmpf ogt, %0, %1 : vector<48x48xf32>
    %c0_1 = arith.constant 0 : index
    %c0_2 = arith.constant 0 : index
    %3 = vector.load %arg1[%c0_1, %c0_2] : memref<48x32xf32, #tpu.memory_space<vmem>>, vector<48x32xf32>
    %c0_3 = arith.constant 0 : index
    %c0_4 = arith.constant 0 : index
    %c0_5 = arith.constant 0 : index
    %4 = vector.load %arg4[%c0_3, %c0_4, %c0_5] : memref<4x32x3xf32, #tpu.memory_space<vmem>>, vector<1x32x3xf32>
    %5 = vector.shape_cast %4 : vector<1x32x3xf32> to vector<32x3xf32>
    %c1 = arith.constant 1 : index
    %c0_6 = arith.constant 0 : index
    %c0_7 = arith.constant 0 : index
    %6 = vector.load %arg4[%c1, %c0_6, %c0_7] : memref<4x32x3xf32, #tpu.memory_space<vmem>>, vector<1x32x3xf32>
    %7 = vector.shape_cast %6 : vector<1x32x3xf32> to vector<32x3xf32>
    %cst_8 = arith.constant dense<0.000000e+00> : vector<48x3xf32>
    %8 = tpu.matmul %3, %5, %cst_8 {dimension_numbers = #tpu.dot_dimension_numbers<[1], [0], [0], [1], [0, 0, 1, 1], [], []>} : vector<48x32xf32>, vector<32x3xf32>, vector<48x3xf32> -> vector<48x3xf32>
    %cst_9 = arith.constant dense<0.000000e+00> : vector<48x3xf32>
    %9 = tpu.matmul %3, %7, %cst_9 {dimension_numbers = #tpu.dot_dimension_numbers<[1], [0], [0], [1], [0, 0, 1, 1], [], []>} : vector<48x32xf32>, vector<32x3xf32>, vector<48x3xf32> -> vector<48x3xf32>
    %10 = tpu.transpose %8, [1, 0] : vector<48x3xf32> -> vector<3x48xf32>
    %cst_10 = arith.constant 0.000000e+00 : f32
    %11 = vector.broadcast %cst_10 : f32 to vector<48x32xf32>
    %c0_11 = arith.constant 0 : index
    %c0_12 = arith.constant 0 : index
    %c0_13 = arith.constant 0 : index
    %12 = vector.load %arg3[%c0_11, %c0_12, %c0_13] : memref<6x32x32xf32, #tpu.memory_space<vmem>>, vector<1x32x32xf32>
    %13 = vector.shape_cast %12 : vector<1x32x32xf32> to vector<32x32xf32>
    %cst_14 = arith.constant dense<0.000000e+00> : vector<48x32xf32>
    %14 = tpu.matmul %3, %13, %cst_14 {dimension_numbers = #tpu.dot_dimension_numbers<[1], [0], [0], [1], [0, 0, 1, 1], [], []>} : vector<48x32xf32>, vector<32x32xf32>, vector<48x32xf32> -> vector<48x32xf32>
    %15 = vector.extract_strided_slice %9 {offsets = [0, 0], sizes = [48, 1], strides = [1, 1]} : vector<48x3xf32> to vector<48x1xf32>
    %16 = vector.extract_strided_slice %10 {offsets = [0, 0], sizes = [1, 48], strides = [1, 1]} : vector<3x48xf32> to vector<1x48xf32>
    %17 = vector.broadcast %15 : vector<48x1xf32> to vector<48x48xf32>
    %18 = vector.broadcast %16 : vector<1x48xf32> to vector<48x48xf32>
    %19 = arith.addf %17, %18 : vector<48x48xf32>
    %cst_15 = arith.constant 0.000000e+00 : f32
    %20 = vector.broadcast %cst_15 : f32 to vector<48x48xf32>
    %21 = arith.cmpf ogt, %19, %20 : vector<48x48xf32>
    %cst_16 = arith.constant 2.000000e-01 : f32
    %22 = vector.broadcast %cst_16 : f32 to vector<48x48xf32>
    %23 = arith.mulf %22, %19 : vector<48x48xf32>
    %24 = arith.select %21, %19, %23 : vector<48x48xi1>, vector<48x48xf32>
    %cst_17 = arith.constant -1.000000e+30 : f32
    %25 = vector.broadcast %cst_17 : f32 to vector<48x48xf32>
    %26 = arith.select %2, %24, %25 : vector<48x48xi1>, vector<48x48xf32>
    %cst_18 = arith.constant dense<0xFF800000> : vector<48xf32>
    %27 = vector.multi_reduction <maximumf>, %26, %cst_18 [1] : vector<48x48xf32> to vector<48xf32>
    %28 = vector.shape_cast %27 : vector<48xf32> to vector<48x1xf32>
    %29 = vector.broadcast %28 : vector<48x1xf32> to vector<48x48xf32>
    %30 = arith.subf %26, %29 : vector<48x48xf32>
    %31 = math.exp %30 : vector<48x48xf32>
    %cst_19 = arith.constant dense<0.000000e+00> : vector<48xf32>
    %32 = vector.multi_reduction <add>, %31, %cst_19 [1] : vector<48x48xf32> to vector<48xf32>
    %33 = vector.shape_cast %32 : vector<48xf32> to vector<48x1xf32>
    %34 = tpu.reciprocal %33 {approx = true} : vector<48x1xf32> -> vector<48x1xf32>
    %35 = vector.broadcast %34 : vector<48x1xf32> to vector<48x48xf32>
    %36 = arith.mulf %31, %35 : vector<48x48xf32>
    %cst_20 = arith.constant dense<0.000000e+00> : vector<48x32xf32>
    %37 = tpu.matmul %36, %14, %cst_20 {dimension_numbers = #tpu.dot_dimension_numbers<[1], [0], [0], [1], [0, 0, 1, 1], [], []>} : vector<48x48xf32>, vector<48x32xf32>, vector<48x32xf32> -> vector<48x32xf32>
    %38 = arith.addf %11, %37 : vector<48x32xf32>
    %c1_21 = arith.constant 1 : index
    %c0_22 = arith.constant 0 : index
    %c0_23 = arith.constant 0 : index
    %39 = vector.load %arg3[%c1_21, %c0_22, %c0_23] : memref<6x32x32xf32, #tpu.memory_space<vmem>>, vector<1x32x32xf32>
    %40 = vector.shape_cast %39 : vector<1x32x32xf32> to vector<32x32xf32>
    %cst_24 = arith.constant dense<0.000000e+00> : vector<48x32xf32>
    %41 = tpu.matmul %3, %40, %cst_24 {dimension_numbers = #tpu.dot_dimension_numbers<[1], [0], [0], [1], [0, 0, 1, 1], [], []>} : vector<48x32xf32>, vector<32x32xf32>, vector<48x32xf32> -> vector<48x32xf32>
    %42 = vector.extract_strided_slice %9 {offsets = [0, 1], sizes = [48, 1], strides = [1, 1]} : vector<48x3xf32> to vector<48x1xf32>
    %43 = vector.extract_strided_slice %10 {offsets = [1, 0], sizes = [1, 48], strides = [1, 1]} : vector<3x48xf32> to vector<1x48xf32>
    %44 = vector.broadcast %42 : vector<48x1xf32> to vector<48x48xf32>
    %45 = vector.broadcast %43 : vector<1x48xf32> to vector<48x48xf32>
    %46 = arith.addf %44, %45 : vector<48x48xf32>
    %cst_25 = arith.constant 0.000000e+00 : f32
    %47 = vector.broadcast %cst_25 : f32 to vector<48x48xf32>
    %48 = arith.cmpf ogt, %46, %47 : vector<48x48xf32>
    %cst_26 = arith.constant 2.000000e-01 : f32
    %49 = vector.broadcast %cst_26 : f32 to vector<48x48xf32>
    %50 = arith.mulf %49, %46 : vector<48x48xf32>
    %51 = arith.select %48, %46, %50 : vector<48x48xi1>, vector<48x48xf32>
    %cst_27 = arith.constant -1.000000e+30 : f32
    %52 = vector.broadcast %cst_27 : f32 to vector<48x48xf32>
    %53 = arith.select %2, %51, %52 : vector<48x48xi1>, vector<48x48xf32>
    %cst_28 = arith.constant dense<0xFF800000> : vector<48xf32>
    %54 = vector.multi_reduction <maximumf>, %53, %cst_28 [1] : vector<48x48xf32> to vector<48xf32>
    %55 = vector.shape_cast %54 : vector<48xf32> to vector<48x1xf32>
    %56 = vector.broadcast %55 : vector<48x1xf32> to vector<48x48xf32>
    %57 = arith.subf %53, %56 : vector<48x48xf32>
    %58 = math.exp %57 : vector<48x48xf32>
    %cst_29 = arith.constant dense<0.000000e+00> : vector<48xf32>
    %59 = vector.multi_reduction <add>, %58, %cst_29 [1] : vector<48x48xf32> to vector<48xf32>
    %60 = vector.shape_cast %59 : vector<48xf32> to vector<48x1xf32>
    %61 = tpu.reciprocal %60 {approx = true} : vector<48x1xf32> -> vector<48x1xf32>
    %62 = vector.broadcast %61 : vector<48x1xf32> to vector<48x48xf32>
    %63 = arith.mulf %58, %62 : vector<48x48xf32>
    %cst_30 = arith.constant dense<0.000000e+00> : vector<48x32xf32>
    %64 = tpu.matmul %63, %41, %cst_30 {dimension_numbers = #tpu.dot_dimension_numbers<[1], [0], [0], [1], [0, 0, 1, 1], [], []>} : vector<48x48xf32>, vector<48x32xf32>, vector<48x32xf32> -> vector<48x32xf32>
    %65 = arith.addf %38, %64 : vector<48x32xf32>
    %c2 = arith.constant 2 : index
    %c0_31 = arith.constant 0 : index
    %c0_32 = arith.constant 0 : index
    %66 = vector.load %arg3[%c2, %c0_31, %c0_32] : memref<6x32x32xf32, #tpu.memory_space<vmem>>, vector<1x32x32xf32>
    %67 = vector.shape_cast %66 : vector<1x32x32xf32> to vector<32x32xf32>
    %cst_33 = arith.constant dense<0.000000e+00> : vector<48x32xf32>
    %68 = tpu.matmul %3, %67, %cst_33 {dimension_numbers = #tpu.dot_dimension_numbers<[1], [0], [0], [1], [0, 0, 1, 1], [], []>} : vector<48x32xf32>, vector<32x32xf32>, vector<48x32xf32> -> vector<48x32xf32>
    %69 = vector.extract_strided_slice %9 {offsets = [0, 2], sizes = [48, 1], strides = [1, 1]} : vector<48x3xf32> to vector<48x1xf32>
    %70 = vector.extract_strided_slice %10 {offsets = [2, 0], sizes = [1, 48], strides = [1, 1]} : vector<3x48xf32> to vector<1x48xf32>
    %71 = vector.broadcast %69 : vector<48x1xf32> to vector<48x48xf32>
    %72 = vector.broadcast %70 : vector<1x48xf32> to vector<48x48xf32>
    %73 = arith.addf %71, %72 : vector<48x48xf32>
    %cst_34 = arith.constant 0.000000e+00 : f32
    %74 = vector.broadcast %cst_34 : f32 to vector<48x48xf32>
    %75 = arith.cmpf ogt, %73, %74 : vector<48x48xf32>
    %cst_35 = arith.constant 2.000000e-01 : f32
    %76 = vector.broadcast %cst_35 : f32 to vector<48x48xf32>
    %77 = arith.mulf %76, %73 : vector<48x48xf32>
    %78 = arith.select %75, %73, %77 : vector<48x48xi1>, vector<48x48xf32>
    %cst_36 = arith.constant -1.000000e+30 : f32
    %79 = vector.broadcast %cst_36 : f32 to vector<48x48xf32>
    %80 = arith.select %2, %78, %79 : vector<48x48xi1>, vector<48x48xf32>
    %cst_37 = arith.constant dense<0xFF800000> : vector<48xf32>
    %81 = vector.multi_reduction <maximumf>, %80, %cst_37 [1] : vector<48x48xf32> to vector<48xf32>
    %82 = vector.shape_cast %81 : vector<48xf32> to vector<48x1xf32>
    %83 = vector.broadcast %82 : vector<48x1xf32> to vector<48x48xf32>
    %84 = arith.subf %80, %83 : vector<48x48xf32>
    %85 = math.exp %84 : vector<48x48xf32>
    %cst_38 = arith.constant dense<0.000000e+00> : vector<48xf32>
    %86 = vector.multi_reduction <add>, %85, %cst_38 [1] : vector<48x48xf32> to vector<48xf32>
    %87 = vector.shape_cast %86 : vector<48xf32> to vector<48x1xf32>
    %88 = tpu.reciprocal %87 {approx = true} : vector<48x1xf32> -> vector<48x1xf32>
    %89 = vector.broadcast %88 : vector<48x1xf32> to vector<48x48xf32>
    %90 = arith.mulf %85, %89 : vector<48x48xf32>
    %cst_39 = arith.constant dense<0.000000e+00> : vector<48x32xf32>
    %91 = tpu.matmul %90, %68, %cst_39 {dimension_numbers = #tpu.dot_dimension_numbers<[1], [0], [0], [1], [0, 0, 1, 1], [], []>} : vector<48x48xf32>, vector<48x32xf32>, vector<48x32xf32> -> vector<48x32xf32>
    %92 = arith.addf %65, %91 : vector<48x32xf32>
    %cst_40 = arith.constant 0.333333343 : f32
    %93 = vector.broadcast %cst_40 : f32 to vector<48x32xf32>
    %94 = arith.mulf %92, %93 : vector<48x32xf32>
    %c0_41 = arith.constant 0 : index
    %c0_42 = arith.constant 0 : index
    %c0_43 = arith.constant 0 : index
    %95 = vector.load %arg5[%c0_41, %c0_42, %c0_43] : memref<2x1x32xf32, #tpu.memory_space<vmem>>, vector<1x1x32xf32>
    %96 = vector.shape_cast %95 : vector<1x1x32xf32> to vector<1x32xf32>
    %97 = vector.broadcast %96 : vector<1x32xf32> to vector<48x32xf32>
    %98 = arith.addf %94, %97 : vector<48x32xf32>
    %c2_44 = arith.constant 2 : index
    %c0_45 = arith.constant 0 : index
    %c0_46 = arith.constant 0 : index
    %99 = vector.load %arg4[%c2_44, %c0_45, %c0_46] : memref<4x32x3xf32, #tpu.memory_space<vmem>>, vector<1x32x3xf32>
    %100 = vector.shape_cast %99 : vector<1x32x3xf32> to vector<32x3xf32>
    %c3 = arith.constant 3 : index
    %c0_47 = arith.constant 0 : index
    %c0_48 = arith.constant 0 : index
    %101 = vector.load %arg4[%c3, %c0_47, %c0_48] : memref<4x32x3xf32, #tpu.memory_space<vmem>>, vector<1x32x3xf32>
    %102 = vector.shape_cast %101 : vector<1x32x3xf32> to vector<32x3xf32>
    %cst_49 = arith.constant dense<0.000000e+00> : vector<48x3xf32>
    %103 = tpu.matmul %98, %100, %cst_49 {dimension_numbers = #tpu.dot_dimension_numbers<[1], [0], [0], [1], [0, 0, 1, 1], [], []>} : vector<48x32xf32>, vector<32x3xf32>, vector<48x3xf32> -> vector<48x3xf32>
    %cst_50 = arith.constant dense<0.000000e+00> : vector<48x3xf32>
    %104 = tpu.matmul %98, %102, %cst_50 {dimension_numbers = #tpu.dot_dimension_numbers<[1], [0], [0], [1], [0, 0, 1, 1], [], []>} : vector<48x32xf32>, vector<32x3xf32>, vector<48x3xf32> -> vector<48x3xf32>
    %105 = tpu.transpose %103, [1, 0] : vector<48x3xf32> -> vector<3x48xf32>
    %cst_51 = arith.constant 0.000000e+00 : f32
    %106 = vector.broadcast %cst_51 : f32 to vector<48x32xf32>
    %c3_52 = arith.constant 3 : index
    %c0_53 = arith.constant 0 : index
    %c0_54 = arith.constant 0 : index
    %107 = vector.load %arg3[%c3_52, %c0_53, %c0_54] : memref<6x32x32xf32, #tpu.memory_space<vmem>>, vector<1x32x32xf32>
    %108 = vector.shape_cast %107 : vector<1x32x32xf32> to vector<32x32xf32>
    %cst_55 = arith.constant dense<0.000000e+00> : vector<48x32xf32>
    %109 = tpu.matmul %98, %108, %cst_55 {dimension_numbers = #tpu.dot_dimension_numbers<[1], [0], [0], [1], [0, 0, 1, 1], [], []>} : vector<48x32xf32>, vector<32x32xf32>, vector<48x32xf32> -> vector<48x32xf32>
    %110 = vector.extract_strided_slice %104 {offsets = [0, 0], sizes = [48, 1], strides = [1, 1]} : vector<48x3xf32> to vector<48x1xf32>
    %111 = vector.extract_strided_slice %105 {offsets = [0, 0], sizes = [1, 48], strides = [1, 1]} : vector<3x48xf32> to vector<1x48xf32>
    %112 = vector.broadcast %110 : vector<48x1xf32> to vector<48x48xf32>
    %113 = vector.broadcast %111 : vector<1x48xf32> to vector<48x48xf32>
    %114 = arith.addf %112, %113 : vector<48x48xf32>
    %cst_56 = arith.constant 0.000000e+00 : f32
    %115 = vector.broadcast %cst_56 : f32 to vector<48x48xf32>
    %116 = arith.cmpf ogt, %114, %115 : vector<48x48xf32>
    %cst_57 = arith.constant 2.000000e-01 : f32
    %117 = vector.broadcast %cst_57 : f32 to vector<48x48xf32>
    %118 = arith.mulf %117, %114 : vector<48x48xf32>
    %119 = arith.select %116, %114, %118 : vector<48x48xi1>, vector<48x48xf32>
    %cst_58 = arith.constant -1.000000e+30 : f32
    %120 = vector.broadcast %cst_58 : f32 to vector<48x48xf32>
    %121 = arith.select %2, %119, %120 : vector<48x48xi1>, vector<48x48xf32>
    %cst_59 = arith.constant dense<0xFF800000> : vector<48xf32>
    %122 = vector.multi_reduction <maximumf>, %121, %cst_59 [1] : vector<48x48xf32> to vector<48xf32>
    %123 = vector.shape_cast %122 : vector<48xf32> to vector<48x1xf32>
    %124 = vector.broadcast %123 : vector<48x1xf32> to vector<48x48xf32>
    %125 = arith.subf %121, %124 : vector<48x48xf32>
    %126 = math.exp %125 : vector<48x48xf32>
    %cst_60 = arith.constant dense<0.000000e+00> : vector<48xf32>
    %127 = vector.multi_reduction <add>, %126, %cst_60 [1] : vector<48x48xf32> to vector<48xf32>
    %128 = vector.shape_cast %127 : vector<48xf32> to vector<48x1xf32>
    %129 = tpu.reciprocal %128 {approx = true} : vector<48x1xf32> -> vector<48x1xf32>
    %130 = vector.broadcast %129 : vector<48x1xf32> to vector<48x48xf32>
    %131 = arith.mulf %126, %130 : vector<48x48xf32>
    %cst_61 = arith.constant dense<0.000000e+00> : vector<48x32xf32>
    %132 = tpu.matmul %131, %109, %cst_61 {dimension_numbers = #tpu.dot_dimension_numbers<[1], [0], [0], [1], [0, 0, 1, 1], [], []>} : vector<48x48xf32>, vector<48x32xf32>, vector<48x32xf32> -> vector<48x32xf32>
    %133 = arith.addf %106, %132 : vector<48x32xf32>
    %c4 = arith.constant 4 : index
    %c0_62 = arith.constant 0 : index
    %c0_63 = arith.constant 0 : index
    %134 = vector.load %arg3[%c4, %c0_62, %c0_63] : memref<6x32x32xf32, #tpu.memory_space<vmem>>, vector<1x32x32xf32>
    %135 = vector.shape_cast %134 : vector<1x32x32xf32> to vector<32x32xf32>
    %cst_64 = arith.constant dense<0.000000e+00> : vector<48x32xf32>
    %136 = tpu.matmul %98, %135, %cst_64 {dimension_numbers = #tpu.dot_dimension_numbers<[1], [0], [0], [1], [0, 0, 1, 1], [], []>} : vector<48x32xf32>, vector<32x32xf32>, vector<48x32xf32> -> vector<48x32xf32>
    %137 = vector.extract_strided_slice %104 {offsets = [0, 1], sizes = [48, 1], strides = [1, 1]} : vector<48x3xf32> to vector<48x1xf32>
    %138 = vector.extract_strided_slice %105 {offsets = [1, 0], sizes = [1, 48], strides = [1, 1]} : vector<3x48xf32> to vector<1x48xf32>
    %139 = vector.broadcast %137 : vector<48x1xf32> to vector<48x48xf32>
    %140 = vector.broadcast %138 : vector<1x48xf32> to vector<48x48xf32>
    %141 = arith.addf %139, %140 : vector<48x48xf32>
    %cst_65 = arith.constant 0.000000e+00 : f32
    %142 = vector.broadcast %cst_65 : f32 to vector<48x48xf32>
    %143 = arith.cmpf ogt, %141, %142 : vector<48x48xf32>
    %cst_66 = arith.constant 2.000000e-01 : f32
    %144 = vector.broadcast %cst_66 : f32 to vector<48x48xf32>
    %145 = arith.mulf %144, %141 : vector<48x48xf32>
    %146 = arith.select %143, %141, %145 : vector<48x48xi1>, vector<48x48xf32>
    %cst_67 = arith.constant -1.000000e+30 : f32
    %147 = vector.broadcast %cst_67 : f32 to vector<48x48xf32>
    %148 = arith.select %2, %146, %147 : vector<48x48xi1>, vector<48x48xf32>
    %cst_68 = arith.constant dense<0xFF800000> : vector<48xf32>
    %149 = vector.multi_reduction <maximumf>, %148, %cst_68 [1] : vector<48x48xf32> to vector<48xf32>
    %150 = vector.shape_cast %149 : vector<48xf32> to vector<48x1xf32>
    %151 = vector.broadcast %150 : vector<48x1xf32> to vector<48x48xf32>
    %152 = arith.subf %148, %151 : vector<48x48xf32>
    %153 = math.exp %152 : vector<48x48xf32>
    %cst_69 = arith.constant dense<0.000000e+00> : vector<48xf32>
    %154 = vector.multi_reduction <add>, %153, %cst_69 [1] : vector<48x48xf32> to vector<48xf32>
    %155 = vector.shape_cast %154 : vector<48xf32> to vector<48x1xf32>
    %156 = tpu.reciprocal %155 {approx = true} : vector<48x1xf32> -> vector<48x1xf32>
    %157 = vector.broadcast %156 : vector<48x1xf32> to vector<48x48xf32>
    %158 = arith.mulf %153, %157 : vector<48x48xf32>
    %cst_70 = arith.constant dense<0.000000e+00> : vector<48x32xf32>
    %159 = tpu.matmul %158, %136, %cst_70 {dimension_numbers = #tpu.dot_dimension_numbers<[1], [0], [0], [1], [0, 0, 1, 1], [], []>} : vector<48x48xf32>, vector<48x32xf32>, vector<48x32xf32> -> vector<48x32xf32>
    %160 = arith.addf %133, %159 : vector<48x32xf32>
    %c5 = arith.constant 5 : index
    %c0_71 = arith.constant 0 : index
    %c0_72 = arith.constant 0 : index
    %161 = vector.load %arg3[%c5, %c0_71, %c0_72] : memref<6x32x32xf32, #tpu.memory_space<vmem>>, vector<1x32x32xf32>
    %162 = vector.shape_cast %161 : vector<1x32x32xf32> to vector<32x32xf32>
    %cst_73 = arith.constant dense<0.000000e+00> : vector<48x32xf32>
    %163 = tpu.matmul %98, %162, %cst_73 {dimension_numbers = #tpu.dot_dimension_numbers<[1], [0], [0], [1], [0, 0, 1, 1], [], []>} : vector<48x32xf32>, vector<32x32xf32>, vector<48x32xf32> -> vector<48x32xf32>
    %164 = vector.extract_strided_slice %104 {offsets = [0, 2], sizes = [48, 1], strides = [1, 1]} : vector<48x3xf32> to vector<48x1xf32>
    %165 = vector.extract_strided_slice %105 {offsets = [2, 0], sizes = [1, 48], strides = [1, 1]} : vector<3x48xf32> to vector<1x48xf32>
    %166 = vector.broadcast %164 : vector<48x1xf32> to vector<48x48xf32>
    %167 = vector.broadcast %165 : vector<1x48xf32> to vector<48x48xf32>
    %168 = arith.addf %166, %167 : vector<48x48xf32>
    %cst_74 = arith.constant 0.000000e+00 : f32
    %169 = vector.broadcast %cst_74 : f32 to vector<48x48xf32>
    %170 = arith.cmpf ogt, %168, %169 : vector<48x48xf32>
    %cst_75 = arith.constant 2.000000e-01 : f32
    %171 = vector.broadcast %cst_75 : f32 to vector<48x48xf32>
    %172 = arith.mulf %171, %168 : vector<48x48xf32>
    %173 = arith.select %170, %168, %172 : vector<48x48xi1>, vector<48x48xf32>
    %cst_76 = arith.constant -1.000000e+30 : f32
    %174 = vector.broadcast %cst_76 : f32 to vector<48x48xf32>
    %175 = arith.select %2, %173, %174 : vector<48x48xi1>, vector<48x48xf32>
    %cst_77 = arith.constant dense<0xFF800000> : vector<48xf32>
    %176 = vector.multi_reduction <maximumf>, %175, %cst_77 [1] : vector<48x48xf32> to vector<48xf32>
    %177 = vector.shape_cast %176 : vector<48xf32> to vector<48x1xf32>
    %178 = vector.broadcast %177 : vector<48x1xf32> to vector<48x48xf32>
    %179 = arith.subf %175, %178 : vector<48x48xf32>
    %180 = math.exp %179 : vector<48x48xf32>
    %cst_78 = arith.constant dense<0.000000e+00> : vector<48xf32>
    %181 = vector.multi_reduction <add>, %180, %cst_78 [1] : vector<48x48xf32> to vector<48xf32>
    %182 = vector.shape_cast %181 : vector<48xf32> to vector<48x1xf32>
    %183 = tpu.reciprocal %182 {approx = true} : vector<48x1xf32> -> vector<48x1xf32>
    %184 = vector.broadcast %183 : vector<48x1xf32> to vector<48x48xf32>
    %185 = arith.mulf %180, %184 : vector<48x48xf32>
    %cst_79 = arith.constant dense<0.000000e+00> : vector<48x32xf32>
    %186 = tpu.matmul %185, %163, %cst_79 {dimension_numbers = #tpu.dot_dimension_numbers<[1], [0], [0], [1], [0, 0, 1, 1], [], []>} : vector<48x48xf32>, vector<48x32xf32>, vector<48x32xf32> -> vector<48x32xf32>
    %187 = arith.addf %160, %186 : vector<48x32xf32>
    %cst_80 = arith.constant 0.333333343 : f32
    %188 = vector.broadcast %cst_80 : f32 to vector<48x32xf32>
    %189 = arith.mulf %187, %188 : vector<48x32xf32>
    %c1_81 = arith.constant 1 : index
    %c0_82 = arith.constant 0 : index
    %c0_83 = arith.constant 0 : index
    %190 = vector.load %arg5[%c1_81, %c0_82, %c0_83] : memref<2x1x32xf32, #tpu.memory_space<vmem>>, vector<1x1x32xf32>
    %191 = vector.shape_cast %190 : vector<1x1x32xf32> to vector<1x32xf32>
    %192 = vector.broadcast %191 : vector<1x32xf32> to vector<48x32xf32>
    %193 = arith.addf %189, %192 : vector<48x32xf32>
    %194 = vector.shape_cast %193 : vector<48x32xf32> to vector<6x8x32xf32>
    %cst_84 = arith.constant dense<0xFF800000> : vector<6x32xf32>
    %195 = vector.multi_reduction <maximumf>, %194, %cst_84 [1] : vector<6x8x32xf32> to vector<6x32xf32>
    %c0_85 = arith.constant 0 : index
    %c0_86 = arith.constant 0 : index
    %196 = vector.load %arg6[%c0_85, %c0_86] : memref<6x32xf32, #tpu.memory_space<vmem>>, vector<6x32xf32>
    tpu.vector_store %arg6[%c0_85, %c0_86], %195 {strides = array<i32>} : memref<6x32xf32, #tpu.memory_space<vmem>>, vector<6x32xf32>,
    return
  }
  func.func @transform_0(%arg0: i32) -> (i32, i32) {
    %c0_i32 = arith.constant 0 : i32
    %c0_i32_0 = arith.constant 0 : i32
    %c0_i32_1 = arith.constant 0 : i32
    return %c0_i32, %c0_i32_0 : i32, i32
  }
  func.func @transform_1(%arg0: i32) -> (i32, i32) {
    %c0_i32 = arith.constant 0 : i32
    %c0_i32_0 = arith.constant 0 : i32
    %c0_i32_1 = arith.constant 0 : i32
    return %c0_i32, %c0_i32_0 : i32, i32
  }
  func.func @transform_2(%arg0: i32) -> (i32, i32, i32) {
    %c0_i32 = arith.constant 0 : i32
    %c0_i32_0 = arith.constant 0 : i32
    %c0_i32_1 = arith.constant 0 : i32
    %c0_i32_2 = arith.constant 0 : i32
    return %c0_i32, %c0_i32_0, %c0_i32_1 : i32, i32, i32
  }
  func.func @transform_3(%arg0: i32) -> (i32, i32, i32) {
    %c0_i32 = arith.constant 0 : i32
    %c0_i32_0 = arith.constant 0 : i32
    %c0_i32_1 = arith.constant 0 : i32
    %c0_i32_2 = arith.constant 0 : i32
    return %c0_i32, %c0_i32_0, %c0_i32_1 : i32, i32, i32
  }
  func.func @transform_4(%arg0: i32) -> (i32, i32, i32) {
    %c0_i32 = arith.constant 0 : i32
    %c0_i32_0 = arith.constant 0 : i32
    %c0_i32_1 = arith.constant 0 : i32
    %c0_i32_2 = arith.constant 0 : i32
    return %c0_i32, %c0_i32_0, %c0_i32_1 : i32, i32, i32
  }
  func.func @transform_5(%arg0: i32) -> (i32, i32) {
    %c0_i32 = arith.constant 0 : i32
    %c0_i32_0 = arith.constant 0 : i32
    %c0_i32_1 = arith.constant 0 : i32
    return %c0_i32, %c0_i32_0 : i32, i32
  }
}

</mosaic_0001>

<bundles_post_ra>
// kernel: tpu_custom_call.1
= control target key start
LH: loop header
LB: loop body
LE: loop exit
PB: predicated region body
PF: predicated region fallthrough
CT: control target
= control target key end

     0   :  { %10 = vsyncpa [#allocation3], 0  ;;  %s4706_s0 = inlined_call_operand.vmem [shape: f32[48,32], index: 0, kind: input, shape index: {}]   ;;  %s4707_s1 = inlined_call_operand.hbm [shape: f32[48,48], index: 1, kind: input, shape index: {}]   ;;  %s4708_s2 = inlined_call_operand.vmem [shape: f32[6,32,32], index: 2, kind: input, shape index: {}]   ;;  %s4709_s3 = inlined_call_operand.vmem [shape: f32[4,32,3], index: 3, kind: input, shape index: {}]   ;;  %s4710_s4 = inlined_call_operand.vmem [shape: f32[2,1,32], index: 4, kind: input, shape index: {}]   ;;  %s4711_s5 = inlined_call_operand.hbm [shape: f32[6,32], index: 5, kind: output, shape index: {}]  }
   0x1   :  { %11 = vsyncpa [#allocation4], 0  ;;  %s3715_s18 = smov [#allocation2]   ;;  %s3667_s22 = scalar_lea.hbm %s4707_s1, 768 }
   0x2   :  { %s19_s19 = sshll.u32 %s3715_s18, 4  ;;  %p3668_p0 = scmp.ne.s32.totalorder %s4707_s1, %s3667_s22  ;;  %s20_s19 = int_to_ptr.vmem [resolvable:$true] %s19_s19 }
   0x3   :  { %p3671_p1 = scmp.lt.u32.totalorder %s3667_s22, %s4707_s1 }
   0x5   :  { %p3673_p2 = pnand %p3671_p1, %p3668_p0 }
   0x7   :  { %3676 = shalt.err (!%p3673_p2)
}
   0x8   :  { %s3677_s27 = scalar_lea.vmem %s20_s19, 768  ;;  %p3682_p4 = scmp.lt.s32.totalorder %s20_s19, %s20_s19 }
   0x9   :  { %p3678_p3 = scmp.ne.s32.totalorder %s20_s19, %s3677_s27  ;;  %p3683_p5 = scmp.lt.s32.totalorder %s3677_s27, %s3677_s27 }
   0xb   :  { %p3684_p6 = por %p3683_p5, %p3682_p4 }
   0xd   :  { %p3685_p7 = pnand %p3684_p6, %p3678_p3 }
   0xf   :  { %3688 = shalt.err (!%p3685_p7)
}
  0x10   :  { %s3716_s28 = smov 128   ;;  %s3717_s29 = smov 8  }
  0x11   :  { %25 = dma.hbm_to_vmem [thread:$0]  %s4707_s1, 768, %s20_s19, [#allocation3], %s3716_s28, %s3716_s28, %s3717_s29  }
  0x12   :  { %3711 = dma.done.wait [#allocation3], 768  }
  0x13   :  { %3712 = vsyncadd [#allocation3], 4294966528  ;;  %vm62_vm0 = vcmask 261120   ;;  %v53_v0 = vld [vmem:[%s4709_s3] sm:$0xff]  ;;  %v54_v1 = vld [vmem:[%s4709_s3 + $0x8] sm:$0xff]  ;;  %v3718_v18 = vmov 1  }
  0x14   :  { %v55_v2 = vld [vmem:[%s4709_s3 + $0x10] sm:$0xff]  ;;  %v3313_v3 = vpack.c.bf16 %v54_v1, %v53_v0  ;;  %v56_v4 = vld [vmem:[%s4709_s3 + $0x18] sm:$0xff]  ;;  %v3779_v5 = vld [vmem:[%s4706_s0] sm:$0xff]  ;;  %3497 = vset.pattern.permute.xlu0 %v3718_v18  ;;  %v3719_v19 = vmov 0   ;;  %v3720_v29 = vmov 2   ;;  %v432_v0 = vlaneseq }
  0x15   :  { %v3317_v6 = vpack.c.bf16 %v56_v4, %v55_v2  ;;  %3025 = vmatprep.mubr.msk.f32.mxu1 %vm62_vm0, %v3779_v5  ;;  %v2714_v7 = vld [vmem:[%s4709_s3 + $0x20] sm:$0xff]  ;;  %v2715_v8 = vld [vmem:[%s4709_s3 + $0x28] sm:$0xff]  ;;  %3059 = vmatprep.mubr.msk.f32.mxu0 %vm62_vm0, %v3779_v5  ;;  %v2716_v10 = vld [vmem:[%s4709_s3 + $0x30] sm:$0xff]  ;;  %vm466_vm2 = vcmask 392192  }
  0x16   :  { %3314 = vmatprep.subr.bf16.mxu1 %v3313_v3  ;;  %v3321_v9 = vpack.c.bf16 %v2715_v8, %v2714_v7  ;;  %v2717_v11 = vld [vmem:[%s4709_s3 + $0x38] sm:$0xff]  ;;  %v3800_v12 = vld [vmem:[%s4706_s0 + $0x8] sm:$0xff]  ;;  %v3805_v13 = vld [vmem:[%s4706_s0 + $0x10] sm:$0xff]  ;;  %3498 = vset.pattern.permute.xlu1 %v3719_v19 }
  0x17   :  { %3316 = vmatpush3.bf16.msra.mxu1 %v3313_v3  ;;  %v3325_v14 = vpack.c.bf16 %v2717_v11, %v2716_v10  ;;  %v3814_v15 = vld [vmem:[%s4706_s0 + $0x18] sm:$0xff]  ;;  %v3819_v16 = vld [vmem:[%s4706_s0 + $0x20] sm:$0xff]  ;;  %v3828_v17 = vld [vmem:[%s4706_s0 + $0x28] sm:$0xff]  ;;  %v3945_v3 = vshrl.u32 %v432_v0, 7 }
  0x18   :  { %3318 = vmatprep.subr.bf16.mxu1 %v3317_v6  ;;  %v2736_v33 = vld [vmem:[%s4708_s2 + $0x20] sm:$0xff]  ;;  %v2737_v34 = vld [vmem:[%s4708_s2 + $0x28] sm:$0xff]  ;;  %v2738_v35 = vld [vmem:[%s4708_s2 + $0x30] sm:$0xff] }
  0x19   :  { %v3337_v36 = vpack.c.bf16 %v2737_v34, %v2736_v33  ;;  %v2739_v37 = vld [vmem:[%s4708_s2 + $0x38] sm:$0xff]  ;;  %v303_v38 = vld [vmem:[%s4708_s2] sm:$0xff]  ;;  %v304_v39 = vld [vmem:[%s4708_s2 + $0x8] sm:$0xff]  ;;  %v659_v7 = vsub.s32 1, %v3945_v3  ;;  %v1109_v8 = vsub.s32 2, %v3945_v3 }
  0x1a   :  { %v3341_v40 = vpack.c.bf16 %v2739_v37, %v2738_v35  ;;  %v3329_v41 = vpack.c.bf16 %v304_v39, %v303_v38  ;;  %v305_v42 = vld [vmem:[%s4708_s2 + $0x10] sm:$0xff]  ;;  %v306_v43 = vld [vmem:[%s4708_s2 + $0x18] sm:$0xff]  ;;  %v2758_v44 = vld [vmem:[%s4708_s2 + $0x40] sm:$0xff] }
  0x1b   :  { %3320 = vmatpush3.bf16.msra.mxu1 %v3317_v6  ;;  %v3333_v45 = vpack.c.bf16 %v306_v43, %v305_v42  ;;  %v2759_v46 = vld [vmem:[%s4708_s2 + $0x48] sm:$0xff]  ;;  %v2760_v49 = vld [vmem:[%s4708_s2 + $0x50] sm:$0xff]  ;;  %v2761_v50 = vld [vmem:[%s4708_s2 + $0x58] sm:$0xff]  ;;  %v434_v6 = vsub.s32 0, %v3945_v3 }
  0x1c   :  { %3322 = vmatprep.subr.bf16.mxu1 %v3321_v9  ;;  %3330 = vmatprep.subr.bf16.mxu0 %v3329_v41  ;;  %v3369_v48 = vpack.c.bf16 %v2759_v46, %v2758_v44  ;;  %v3373_v51 = vpack.c.bf16 %v2761_v50, %v2760_v49  ;;  %v3956_v10 = vld [vmem:[#allocation2 + $0x8] sm:$0xff]  ;;  %v3958_v11 = vld [vmem:[#allocation2 + $0x10] sm:$0xff]  ;;  %v3994_v39 = vld [vmem:[#allocation2 + $0x20] sm:$0xff] }
  0x1d   :  { %3332 = vmatpush3.bf16.msra.mxu0 %v3329_v41  ;;  %vm42_vm3 = vcmp.gt.f32.partialorder %v3956_v10, 0.0  ;;  %vm43_vm4 = vcmp.gt.f32.partialorder %v3958_v11, 0.0  ;;  %vm45_vm12 = vcmp.gt.f32.partialorder %v3994_v39, 0.0 }
  0x1e   :  { %3026 = vmatmul.mubr.msk.f32.vlgmr.msra.gmra.mrb[0].mxu1 %vm62_vm0, %v3800_v12  ;;  %3334 = vmatprep.subr.bf16.mxu0 %v3333_v45 }
  0x1f   :  { %3324 = vmatpush3.bf16.msra.mxu1 %v3321_v9  ;;  %3028 = vmatprep.mubr.msk.f32.mxu1 %vm62_vm0, %v3805_v13  ;;  %v3954_v9 = vld [vmem:[#allocation2 + $0x18] sm:$0xff] }
  0x20   :  { %3326 = vmatprep.subr.bf16.mxu1 %v3325_v14  ;;  %vm44_vm1 = vcmp.gt.f32.partialorder %v3954_v9, 0.0 }
  0x21   :  { %3336 = vmatpush3.bf16.msra.mxu0 %v3333_v45 }
  0x22   :  { %3029 = vmatmul.mubr.msk.f32.gmra.mrb[2].mxu1 %vm62_vm0, %v3814_v15 }
  0x23   :  { %3031 = vmatprep.mubr.msk.f32.mxu1 %vm62_vm0, %v3819_v16  ;;  %3328 = vmatpush3.bf16.msra.mxu1 %v3325_v14 }
  0x24   :  { %3338 = vmatprep.subr.bf16.mxu1 %v3337_v36  ;;  %3060 = vmatmul.mubr.msk.f32.vlgmr.msra.gmra.mrb[0].mxu0 %vm62_vm0, %v3800_v12 }
  0x25   :  { %3062 = vmatprep.mubr.msk.f32.mxu0 %vm62_vm0, %v3805_v13 }
  0x26   :  { %3032 = vmatmul.mubr.msk.f32.gmra.mrb[4].mxu1 %vm62_vm0, %v3828_v17 }
  0x27   :  { %3042 = vmatprep.mubr.msk.f32.mxu1 %vm62_vm0, %v3779_v5 }
  0x28   :  { %3063 = vmatmul.mubr.msk.f32.gmra.mrb[2].mxu0 %vm62_vm0, %v3814_v15 }
  0x29   :  { %3065 = vmatprep.mubr.msk.f32.mxu0 %vm62_vm0, %v3819_v16 }
  0x2a   :  { %3043 = vmatmul.mubr.msk.f32.vlgmr.msra.gmra.mrb[6].mxu1 %vm62_vm0, %v3800_v12 }
  0x2b   :  { %3045 = vmatprep.mubr.msk.f32.mxu1 %vm62_vm0, %v3805_v13  ;;  %3340 = vmatpush3.bf16.msra.mxu1 %v3337_v36 }
  0x2c   :  { %3342 = vmatprep.subr.bf16.mxu1 %v3341_v40  ;;  %3066 = vmatmul.mubr.msk.f32.gmra.mrb[4].mxu0 %vm62_vm0, %v3828_v17 }
  0x2e   :  { %3046 = vmatmul.mubr.msk.f32.gmra.mrb[8].mxu1 %vm62_vm0, %v3814_v15 }
  0x2f   :  { %3048 = vmatprep.mubr.msk.f32.mxu1 %vm62_vm0, %v3819_v16  ;;  %3344 = vmatpush3.bf16.msra.mxu1 %v3341_v40 }
  0x30   :  { %3370 = vmatprep.subr.bf16.mxu1 %v3369_v48 }
  0x32   :  { %3049 = vmatmul.mubr.msk.f32.gmra.mrb[10].mxu1 %vm62_vm0, %v3828_v17 }
  0x33   :  { %3076 = vmatprep.mubr.msk.f32.mxu1 %vm62_vm0, %v3779_v5 }
  0x36   :  { %3077 = vmatmul.mubr.msk.f32.vlgmr.msra.gmra.mrb[12].mxu1 %vm62_vm0, %v3800_v12 }
  0x37   :  { %3079 = vmatprep.mubr.msk.f32.mxu1 %vm62_vm0, %v3805_v13  ;;  %3372 = vmatpush3.bf16.msra.mxu1 %v3369_v48 }
  0x38   :  { %3374 = vmatprep.subr.bf16.mxu1 %v3373_v51 }
  0x3a   :  { %3080 = vmatmul.mubr.msk.f32.gmra.mrb[14].mxu1 %vm62_vm0, %v3814_v15 }
  0x3b   :  { %3082 = vmatprep.mubr.msk.f32.mxu1 %vm62_vm0, %v3819_v16  ;;  %3376 = vmatpush3.bf16.msra.mxu1 %v3373_v51 }
  0x3e   :  { %3083 = vmatmul.mubr.msk.f32.gmra.mrb[16].mxu1 %vm62_vm0, %v3828_v17 }
  0x3f   :  { %3135 = vmatprep.mubr.msk.f32.mxu1 %vm62_vm0, %v3779_v5 }
  0x42   :  { %3136 = vmatmul.mubr.msk.f32.vlgmr.msra.gmra.mrb[18].mxu1 %vm62_vm0, %v3800_v12 }
  0x43   :  { %3138 = vmatprep.mubr.msk.f32.mxu1 %vm62_vm0, %v3805_v13 }
  0x46   :  { %3139 = vmatmul.mubr.msk.f32.gmra.mrb[20].mxu1 %vm62_vm0, %v3814_v15 }
  0x47   :  { %3141 = vmatprep.mubr.msk.f32.mxu1 %vm62_vm0, %v3819_v16  ;;  %v3972_v16 = vld [vmem:[#allocation2] sm:$0xff] }
  0x48   :  { %vm41_vm5 = vcmp.gt.f32.partialorder %v3972_v16, 0.0 }
  0x4a   :  { %3142 = vmatmul.mubr.msk.f32.gmra.mrb[22].mxu1 %vm62_vm0, %v3828_v17 }
  0xf1   :  { %v3027_v20 = vpop.f32.mrb[0].mxu1 }
  0xf2   :  { %v147_v21 = vpop.f32.mrb[1].mxu1 }
  0xf5   :  { %v3030_v22 = vpop.f32.mrb[2].mxu1 }
  0xf6   :  { %v157_v23 = vpop.f32.mrb[3].mxu1 }
  0xf9   :  { %v3033_v24 = vpop.f32.mrb[4].mxu1 }
  0xfa   :  { %v167_v25 = vpop.f32.mrb[5].mxu1 }
  0xfd   :  { %v3044_v26 = vpop.f32.mrb[6].mxu1 }
  0xfe   :  { %409 = vperm.xlu1 %3498, %v3044_v26   ;;  %638 = vperm.xlu0 %3497, %v3044_v26   ;;  %v242_v27 = vpop.f32.mrb[7].mxu1 }
 0x101   :  { %v3047_v28 = vpop.f32.mrb[8].mxu1 }
 0x102   :  { %3502 = vset.pattern.permute.xlu1 %v3720_v29  ;;  %3499 = vset.pattern.permute.xlu0 %v3720_v29  ;;  %v252_v30 = vpop.f32.mrb[9].mxu1 }
 0x103   :  { %1088 = vperm.xlu0 %3499, %v3044_v26   ;;  %1084 = vperm.xlu1 %3502, %v242_v27  }
 0x105   :  { %v3050_v31 = vpop.f32.mrb[10].mxu1 }
 0x106   :  { %v262_v32 = vpop.f32.mrb[11].mxu1 }
 0x107   :  { %3500 = vset.pattern.permute.xlu0 %v3718_v18  ;;  %3503 = vset.pattern.permute.xlu1 %v3718_v18 }
 0x108   :  { %634 = vperm.xlu0 %3500, %v242_v27   ;;  %646 = vperm.xlu1 %3503, %v3047_v28  }
 0x10c   :  { %3501 = vset.pattern.permute.xlu0 %v3719_v19  ;;  %642 = vperm.xlu1 %3503, %v252_v30  }
 0x10d   :  { %404 = vperm.xlu0 %3501, %v242_v27  }
 0x110   :  { %3504 = vset.pattern.permute.xlu1 %v3719_v19 }
 0x111   :  { %419 = vperm.xlu0 %3501, %v3047_v28   ;;  %414 = vperm.xlu1 %3504, %v252_v30  }
 0x115   :  { %3505 = vset.pattern.permute.xlu1 %v3718_v18  ;;  %429 = vperm.xlu0 %3501, %v3050_v31  }
 0x116   :  { %654 = vperm.xlu1 %3505, %v3050_v31  }
 0x119   :  { %3506 = vset.pattern.permute.xlu0 %v3718_v18 }
 0x11a   :  { %3507 = vset.pattern.permute.xlu1 %v3719_v19  ;;  %650 = vperm.xlu0 %3506, %v262_v32  }
 0x11b   :  { %424 = vperm.xlu1 %3507, %v262_v32  }
 0x11e   :  { %3508 = vset.pattern.permute.xlu0 %v3720_v29 }
 0x11f   :  { %1092 = vperm.xlu0 %3508, %v252_v30  }
 0x123   :  { %1096 = vperm.xlu0 %3508, %v3047_v28  }
 0x127   :  { %1104 = vperm.xlu0 %3508, %v3050_v31  }
 0x12b   :  { %1100 = vperm.xlu0 %3508, %v262_v32  }
 0x12f   :  { %3509 = vset.pattern.permute.xlu0 %v3718_v18 }
 0x144   :  { %271 = vxpose.xlu1.b32.start [1/6] (short) (narrow) %v147_v21, 8 }
 0x148   :  { %272 = vxpose.xlu1.b32.cont [2/6] (short) (narrow) %v3027_v20, 8 }
 0x14c   :  { %273 = vxpose.xlu1.b32.cont [3/6] (short) (narrow) %v157_v23, 8 }
 0x150   :  { %274 = vxpose.xlu1.b32.cont [4/6] (short) (narrow) %v3030_v22, 8 }
 0x154   :  { %275 = vxpose.xlu1.b32.cont [5/6] (short) (narrow) %v167_v25, 8 }
 0x158   :  { %276 = vxpose.xlu1.b32.end [6/6] (short) (narrow) %v3033_v24, 8 }
 0x17d   :  { %v3889_v47 = vpop.permute.xlu0 %638  ;;  %v410_v54 = vpop.permute.xlu1 %409 }
 0x182   :  { %v3897_v52 = vpop.permute.xlu0 %1088  ;;  %v3927_v56 = vpop.permute.xlu1 %1084 }
 0x187   :  { %v635_v53 = vpop.permute.xlu0 %634  ;;  %v647_v58 = vpop.permute.xlu1 %646 }
 0x18b   :  { %v643_v60 = vpop.permute.xlu1 %642 }
 0x18c   :  { %v405_v55 = vpop.permute.xlu0 %404 }
 0x190   :  { %v3931_v57 = vpop.permute.xlu0 %419  ;;  %v3939_v62 = vpop.permute.xlu1 %414 }
 0x194   :  { %v3935_v59 = vpop.permute.xlu0 %429 }
 0x195   :  { %v3941_v1 = vpop.permute.xlu1 %654 }
 0x199   :  { %v3937_v61 = vpop.permute.xlu0 %650 }
 0x19a   :  { %v3947_v4 = vpop.permute.xlu1 %424 }
 0x19e   :  { %v1093_v63 = vpop.permute.xlu0 %1092 }
 0x1a2   :  { %v3943_v2 = vpop.permute.xlu0 %1096 }
 0x1a6   :  { %v3949_v5 = vpop.permute.xlu0 %1104 }
 0x1aa   :  { %v1101_v17 = vpop.permute.xlu0 %1100 }
 0x1c4   :  { %v287_v12 = vpop.trf.xlu1 }
 0x1c5   :  { %v3962_v13 = vrot.slane %v287_v12, %v434_v6  ;;  %v3966_v14 = vrot.slane %v287_v12, %v659_v7  ;;  %v3970_v15 = vrot.slane %v287_v12, %v1109_v8 }
 0x1c7   :  { %v664_v20 = vadd.f32 %v3966_v14, %v647_v58  ;;  %v662_v21 = vadd.f32 %v3966_v14, %v3889_v47  ;;  %v1113_v22 = vadd.f32 %v3970_v15, %v1093_v63  ;;  %v661_v23 = vadd.f32 %v3966_v14, %v635_v53 }
 0x1c8   :  { %v1115_v24 = vadd.f32 %v3970_v15, %v1101_v17  ;;  %v436_v25 = vadd.f32 %v3962_v13, %v405_v55  ;;  %v437_v26 = vadd.f32 %v3962_v13, %v410_v54  ;;  %v663_v46 = vadd.f32 %v3966_v14, %v643_v60 }
 0x1c9   :  { %vm670_vm6 = vcmp.gt.f32.partialorder %v664_v20, 0.0  ;;  %v676_v27 = vmul.f32 0.2, %v664_v20  ;;  %vm668_vm7 = vcmp.gt.f32.partialorder %v662_v21, 0.0  ;;  %v674_v28 = vmul.f32 0.2, %v662_v21 }
 0x1ca   :  { %vm1119_vm8 = vcmp.gt.f32.partialorder %v1113_v22, 0.0  ;;  %v1125_v30 = vmul.f32 0.2, %v1113_v22  ;;  %vm667_vm9 = vcmp.gt.f32.partialorder %v661_v23, 0.0  ;;  %v673_v31 = vmul.f32 0.2, %v661_v23 }
 0x1cb   :  { %v682_v32 = vsel %vm670_vm6, %v664_v20, %v676_v27  ;;  %v680_v33 = vsel %vm668_vm7, %v662_v21, %v674_v28  ;;  %vm1121_vm10 = vcmp.gt.f32.partialorder %v1115_v24, 0.0  ;;  %v1127_v34 = vmul.f32 0.2, %v1115_v24 }
 0x1cc   :  { %v3988_v35 = vsel %vm44_vm1, %v682_v32, -1e+30  ;;  %v3992_v36 = vsel %vm42_vm3, %v680_v33, -1e+30  ;;  %v1131_v37 = vsel %vm1119_vm8, %v1113_v22, %v1125_v30  ;;  %v679_v38 = vsel %vm667_vm9, %v661_v23, %v673_v31 }
 0x1cd   :  { %v700_v40 = vsel %vm466_vm2, %v3988_v35, -inf  ;;  %v694_v41 = vsel %vm466_vm2, %v3992_v36, -inf  ;;  %v4002_v42 = vsel %vm43_vm4, %v1131_v37, -1e+30  ;;  %v4006_v43 = vsel %vm41_vm5, %v679_v38, -1e+30 }
 0x1ce   :  { %701 = vmax.xlane.f32.xlu1 %v700_v40  ;;  %695 = vmax.xlane.f32.xlu0 %v694_v41  ;;  %vm442_vm11 = vcmp.gt.f32.partialorder %v436_v25, 0.0  ;;  %v1133_v44 = vsel %vm1121_vm10, %v1115_v24, %v1127_v34  ;;  %v448_v45 = vmul.f32 0.2, %v436_v25  ;;  %vm443_vm13 = vcmp.gt.f32.partialorder %v437_v26, 0.0 }
 0x1cf   :  { %v449_v47 = vmul.f32 0.2, %v437_v26  ;;  %v1147_v48 = vsel %vm466_vm2, %v4002_v42, -inf  ;;  %v691_v49 = vsel %vm466_vm2, %v4006_v43, -inf  ;;  %v4016_v51 = vsel %vm45_vm12, %v1133_v44, -1e+30 }
 0x1d0   :  { %v454_v50 = vsel %vm442_vm11, %v436_v25, %v448_v45  ;;  %v675_v55 = vmul.f32 0.2, %v663_v46  ;;  %v438_v58 = vadd.f32 %v3962_v13, %v3939_v62  ;;  %vm669_vm14 = vcmp.gt.f32.partialorder %v663_v46, 0.0  ;;  %v4042_v25 = vld [vmem:[#allocation2 + $0x28] sm:$0xff] }
 0x1d1   :  { %v4020_v53 = vsel %vm41_vm5, %v454_v50, -1e+30  ;;  %v455_v54 = vsel %vm443_vm13, %v437_v26, %v449_v47  ;;  %v1153_v60 = vsel %vm466_vm2, %v4016_v51, -inf  ;;  %v666_v20 = vadd.f32 %v3966_v14, %v3941_v1 }
 0x1d2   :  { %1148 = vmax.xlane.f32.xlu1 %v1147_v48  ;;  %692 = vmax.xlane.f32.xlu0 %v691_v49  ;;  %v467_v63 = vsel %vm466_vm2, %v4020_v53, -inf  ;;  %v4030_v0 = vsel %vm42_vm3, %v455_v54, -1e+30  ;;  %v681_v12 = vsel %vm669_vm14, %v663_v46, %v675_v55  ;;  %v450_v17 = vmul.f32 0.2, %v438_v58 }
 0x1d3   :  { %vm444_vm15 = vcmp.gt.f32.partialorder %v438_v58, 0.0  ;;  %v470_v62 = vsel %vm466_vm2, %v4030_v0, -inf  ;;  %v4038_v21 = vsel %vm43_vm4, %v681_v12, -1e+30  ;;  %v678_v23 = vmul.f32 0.2, %v666_v20 }
 0x1d4   :  { %v456_v22 = vsel %vm444_vm15, %v438_v58, %v450_v17  ;;  %v665_v24 = vadd.f32 %v3966_v14, %v3937_v61  ;;  %vm672_vm6 = vcmp.gt.f32.partialorder %v666_v20, 0.0  ;;  %v697_v1 = vsel %vm466_vm2, %v4038_v21, -inf }
 0x1d5   :  { %v4048_v26 = vsel %vm43_vm4, %v456_v22, -1e+30  ;;  %vm46_vm7 = vcmp.gt.f32.partialorder %v4042_v25, 0.0  ;;  %v684_v27 = vsel %vm672_vm6, %v666_v20, %v678_v23  ;;  %v439_v30 = vadd.f32 %v3962_v13, %v3931_v57 }
 0x1d6   :  { %1154 = vmax.xlane.f32.xlu1 %v1153_v60  ;;  %468 = vmax.xlane.f32.xlu0 %v467_v63  ;;  %v677_v28 = vmul.f32 0.2, %v665_v24  ;;  %vm671_vm8 = vcmp.gt.f32.partialorder %v665_v24, 0.0  ;;  %v473_v61 = vsel %vm466_vm2, %v4048_v26, -inf  ;;  %v4057_v14 = vsel %vm46_vm7, %v684_v27, -1e+30 }
 0x1d7   :  { %v451_v32 = vmul.f32 0.2, %v439_v30  ;;  %v441_v33 = vadd.f32 %v3962_v13, %v3935_v59  ;;  %vm445_vm9 = vcmp.gt.f32.partialorder %v439_v30, 0.0  ;;  %v706_v34 = vsel %vm466_vm2, %v4057_v14, -inf }
 0x1d8   :  { %v683_v31 = vsel %vm671_vm8, %v665_v24, %v677_v28  ;;  %v440_v40 = vadd.f32 %v3962_v13, %v3947_v4  ;;  %v1111_v46 = vadd.f32 %v3970_v15, %v3927_v56  ;;  %v1112_v49 = vadd.f32 %v3970_v15, %v3897_v52 }
 0x1d9   :  { %v4065_v57 = vsel %vm45_vm12, %v683_v31, -1e+30  ;;  %v457_v37 = vsel %vm445_vm9, %v439_v30, %v451_v32  ;;  %v453_v38 = vmul.f32 0.2, %v441_v33  ;;  %vm447_vm10 = vcmp.gt.f32.partialorder %v441_v33, 0.0 }
 0x1da   :  { %471 = vmax.xlane.f32.xlu0 %v470_v62  ;;  %v703_v41 = vsel %vm466_vm2, %v4065_v57, -inf  ;;  %v4073_v59 = vsel %vm44_vm1, %v457_v37, -1e+30  ;;  %v452_v45 = vmul.f32 0.2, %v440_v40  ;;  %vm446_vm11 = vcmp.gt.f32.partialorder %v440_v40, 0.0 }
 0x1db   :  { %v459_v44 = vsel %vm447_vm10, %v441_v33, %v453_v38  ;;  %v476_v47 = vsel %vm466_vm2, %v4073_v59, -inf  ;;  %v1123_v48 = vmul.f32 0.2, %v1111_v46  ;;  %vm1117_vm13 = vcmp.gt.f32.partialorder %v1111_v46, 0.0 }
 0x1dc   :  { %v4081_v4 = vsel %vm46_vm7, %v459_v44, -1e+30  ;;  %v458_v13 = vsel %vm446_vm11, %v440_v40, %v452_v45  ;;  %v1124_v55 = vmul.f32 0.2, %v1112_v49  ;;  %v1114_v58 = vadd.f32 %v3970_v15, %v3943_v2 }
 0x1dd   :  { %v482_v50 = vsel %vm466_vm2, %v4081_v4, -inf  ;;  %v4089_v56 = vsel %vm45_vm12, %v458_v13, -1e+30  ;;  %v1129_v54 = vsel %vm1117_vm13, %v1111_v46, %v1123_v48  ;;  %vm1118_vm14 = vcmp.gt.f32.partialorder %v1112_v49, 0.0 }
 0x1de   :  { %698 = vmax.xlane.f32.xlu0 %v697_v1  ;;  %v479_v60 = vsel %vm466_vm2, %v4089_v56, -inf  ;;  %v4097_v52 = vsel %vm41_vm5, %v1129_v54, -1e+30  ;;  %v1130_v63 = vsel %vm1118_vm14, %v1112_v49, %v1124_v55  ;;  %v1126_v12 = vmul.f32 0.2, %v1114_v58 }
 0x1df   :  { %v1116_v17 = vadd.f32 %v3970_v15, %v3949_v5  ;;  %vm1120_vm15 = vcmp.gt.f32.partialorder %v1114_v58, 0.0  ;;  %v1141_v20 = vsel %vm466_vm2, %v4097_v52, -inf  ;;  %v4105_v2 = vsel %vm42_vm3, %v1130_v63, -1e+30 }
 0x1e0   :  { %v1132_v62 = vsel %vm1120_vm15, %v1114_v58, %v1126_v12  ;;  %v1144_v23 = vsel %vm466_vm2, %v4105_v2, -inf }
 0x1e1   :  { %v1128_v22 = vmul.f32 0.2, %v1116_v17  ;;  %vm1122_vm6 = vcmp.gt.f32.partialorder %v1116_v17, 0.0  ;;  %v4111_v24 = vsel %vm44_vm1, %v1132_v62, -1e+30 }
 0x1e2   :  { %474 = vmax.xlane.f32.xlu0 %v473_v61  ;;  %v1150_v15 = vsel %vm466_vm2, %v4111_v24, -inf }
 0x1e3   :  { %v1134_v5 = vsel %vm1122_vm6, %v1116_v17, %v1128_v22 }
 0x1e4   :  { %v4117_v1 = vsel %vm46_vm7, %v1134_v5, -1e+30 }
 0x1e5   :  { %v1156_v27 = vsel %vm466_vm2, %v4117_v1, -inf }
 0x1e6   :  { %707 = vmax.xlane.f32.xlu0 %v706_v34 }
 0x1ea   :  { %704 = vmax.xlane.f32.xlu0 %v703_v41 }
 0x1ee   :  { %477 = vmax.xlane.f32.xlu0 %v476_v47 }
 0x1f2   :  { %483 = vmax.xlane.f32.xlu0 %v482_v50 }
 0x1f6   :  { %480 = vmax.xlane.f32.xlu0 %v479_v60 }
 0x1fa   :  { %1142 = vmax.xlane.f32.xlu0 %v1141_v20 }
 0x1fe   :  { %1145 = vmax.xlane.f32.xlu0 %v1144_v23 }
 0x202   :  { %1151 = vmax.xlane.f32.xlu0 %v1150_v15 }
 0x206   :  { %1157 = vmax.xlane.f32.xlu0 %v1156_v27 }
 0x25b   :  { %v702_v28 = vpop.xlane.xlu1 %701  ;;  %v696_v30 = vpop.xlane.xlu0 %695 }
 0x25c   :  { %v712_v61 = vsub.f32 %v3988_v35, %v702_v28  ;;  %v710_v31 = vsub.f32 %v3992_v36, %v696_v30 }
 0x25e   :  { %v717_v32 = vmul.f32 1.442695, %v710_v31  ;;  %v721_v33 = vmul.f32 1.442695, %v712_v61 }
 0x25f   :  { %v693_v34 = vpop.xlane.xlu0 %692 }
 0x260   :  { %v709_v37 = vsub.f32 %v4006_v43, %v693_v34  ;;  %3523 = vpow2.f32 %v717_v32 }
 0x261   :  { %3525 = vpow2.f32 %v721_v33 }
 0x262   :  { %v715_v38 = vmul.f32 1.442695, %v709_v37  ;;  %v3078_v37 = vpop.f32.mrb[12].mxu1 }
 0x263   :  { %v469_v40 = vpop.xlane.xlu0 %468 }
 0x264   :  { %3527 = vpow2.f32 %v715_v38  ;;  %v485_v55 = vsub.f32 %v4020_v53, %v469_v40 }
 0x266   :  { %v491_v20 = vmul.f32 1.442695, %v485_v55 }
 0x267   :  { %v472_v41 = vpop.xlane.xlu0 %471 }
 0x26a   :  { %v4124_v44 = vpop.eup %3523 }
 0x26b   :  { %v699_v45 = vpop.xlane.xlu0 %698  ;;  %v730_v35 = vsel %vm466_vm2, %v4124_v44, 0.0  ;;  %v4129_v36 = vpop.eup %3525 }
 0x26c   :  { %v711_v46 = vsub.f32 %v4038_v21, %v699_v45  ;;  %731 = vadd.xlane.f32.xlu0 %v730_v35  ;;  %v736_v49 = vsel %vm466_vm2, %v4129_v36, 0.0  ;;  %v486_v21 = vsub.f32 %v4030_v0, %v472_v41  ;;  %v604_v45 = vpop.f32.mrb[13].mxu1 }
 0x26d   :  { %v3345_v35 = vpack.c.bf16 %v3078_v37, %v604_v45 }
 0x26e   :  { %v719_v47 = vmul.f32 1.442695, %v711_v46  ;;  %v4131_v13 = vpop.eup %3527  ;;  %v493_v58 = vmul.f32 1.442695, %v486_v21 }
 0x26f   :  { %v475_v43 = vpop.xlane.xlu0 %474  ;;  %v727_v48 = vsel %vm466_vm2, %v4131_v13, 0.0  ;;  %3346 = vmatprep.subr.bf16.mxu0 %v3345_v35 }
 0x270   :  { %3529 = vpow2.f32 %v719_v47  ;;  %728 = vadd.xlane.f32.xlu1 %v727_v48  ;;  %737 = vadd.xlane.f32.xlu0 %v736_v49  ;;  %v487_v62 = vsub.f32 %v4048_v26, %v475_v43 }
 0x271   :  { %3348 = vmatpush3.bf16.msra.mxu0 %v3345_v35 }
 0x273   :  { %v708_v50 = vpop.xlane.xlu0 %707 }
 0x274   :  { %v714_v54 = vsub.f32 %v4057_v14, %v708_v50  ;;  %v495_v14 = vmul.f32 1.442695, %v487_v62 }
 0x276   :  { %v725_v60 = vmul.f32 1.442695, %v714_v54 }
 0x277   :  { %v705_v63 = vpop.xlane.xlu0 %704 }
 0x278   :  { %3531 = vpow2.f32 %v725_v60  ;;  %v713_v12 = vsub.f32 %v4065_v57, %v705_v63  ;;  %v1149_v57 = vpop.xlane.xlu1 %1148 }
 0x279   :  { %3533 = vpow2.f32 %v493_v58  ;;  %v1161_v33 = vsub.f32 %v4002_v42, %v1149_v57  ;;  %v3081_v42 = vpop.f32.mrb[14].mxu1 }
 0x27a   :  { %v4141_v17 = vpop.eup %3529  ;;  %v723_v22 = vmul.f32 1.442695, %v713_v12  ;;  %v614_v47 = vpop.f32.mrb[15].mxu1 }
 0x27b   :  { %v478_v23 = vpop.xlane.xlu0 %477  ;;  %v733_v0 = vsel %vm466_vm2, %v4141_v17, 0.0  ;;  %v1169_v48 = vmul.f32 1.442695, %v1161_v33  ;;  %v3349_v50 = vpack.c.bf16 %v3081_v42, %v614_v47  ;;  %v3084_v54 = vpop.f32.mrb[16].mxu1 }
 0x27c   :  { %3535 = vpow2.f32 %v723_v22  ;;  %v488_v53 = vsub.f32 %v4073_v59, %v478_v23  ;;  %734 = vadd.xlane.f32.xlu1 %v733_v0  ;;  %v1155_v34 = vpop.xlane.xlu1 %1154  ;;  %v624_v60 = vpop.f32.mrb[17].mxu1 }
 0x27d   :  { %3537 = vpow2.f32 %v491_v20  ;;  %v1163_v49 = vsub.f32 %v4016_v51, %v1155_v34  ;;  %v3353_v51 = vpack.c.bf16 %v3084_v54, %v624_v60  ;;  %3350 = vmatprep.subr.bf16.mxu0 %v3349_v50  ;;  %v3137_v47 = vpop.f32.mrb[18].mxu1 }
 0x27e   :  { %v497_v5 = vmul.f32 1.442695, %v488_v53  ;;  %3352 = vmatpush3.bf16.msra.mxu0 %v3349_v50  ;;  %v1054_v50 = vpop.f32.mrb[19].mxu1 }
 0x27f   :  { %v484_v15 = vpop.xlane.xlu0 %483  ;;  %v1173_v62 = vmul.f32 1.442695, %v1163_v49  ;;  %3354 = vmatprep.subr.bf16.mxu0 %v3353_v51 }
 0x280   :  { %3539 = vpow2.f32 %v497_v5  ;;  %v490_v27 = vsub.f32 %v4081_v4, %v484_v15 }
 0x281   :  { %3541 = vpow2.f32 %v495_v14 }
 0x282   :  { %v4148_v28 = vpop.eup %3531  ;;  %v501_v26 = vmul.f32 1.442695, %v490_v27  ;;  %3356 = vmatpush3.bf16.msra.mxu0 %v3353_v51 }
 0x283   :  { %v481_v30 = vpop.xlane.xlu0 %480  ;;  %v742_v61 = vsel %vm466_vm2, %v4148_v28, 0.0  ;;  %v4152_v31 = vpop.eup %3533 }
 0x284   :  { %3543 = vpow2.f32 %v501_v26  ;;  %v489_v59 = vsub.f32 %v4089_v56, %v481_v30  ;;  %743 = vadd.xlane.f32.xlu0 %v742_v61  ;;  %v506_v40 = vsel %vm466_vm2, %v4152_v31, 0.0 }
 0x286   :  { %v4155_v32 = vpop.eup %3535  ;;  %v499_v4 = vmul.f32 1.442695, %v489_v59 }
 0x287   :  { %v1143_v38 = vpop.xlane.xlu0 %1142  ;;  %v739_v41 = vsel %vm466_vm2, %v4155_v32, 0.0  ;;  %v4162_v46 = vpop.eup %3537 }
 0x288   :  { %3545 = vpow2.f32 %v499_v4  ;;  %v1159_v56 = vsub.f32 %v4097_v52, %v1143_v38  ;;  %507 = vadd.xlane.f32.xlu0 %v506_v40  ;;  %740 = vadd.xlane.f32.xlu1 %v739_v41  ;;  %v503_v58 = vsel %vm466_vm2, %v4162_v46, 0.0  ;;  %v3061_v41 = vpop.f32.mrb[0].mxu0 }
 0x28a   :  { %v4165_v43 = vpop.eup %3539  ;;  %v1165_v21 = vmul.f32 1.442695, %v1159_v56  ;;  %v373_v56 = vpop.f32.mrb[1].mxu0 }
 0x28b   :  { %v1146_v55 = vpop.xlane.xlu0 %1145  ;;  %v512_v52 = vsel %vm466_vm2, %v4165_v43, 0.0  ;;  %v4172_v63 = vpop.eup %3541  ;;  %v3357_v35 = vpack.c.bf16 %v3061_v41, %v373_v56 }
 0x28c   :  { %3547 = vpow2.f32 %v1165_v21  ;;  %v1160_v12 = vsub.f32 %v4105_v2, %v1146_v55  ;;  %504 = vadd.xlane.f32.xlu1 %v503_v58  ;;  %513 = vadd.xlane.f32.xlu0 %v512_v52  ;;  %v509_v0 = vsel %vm466_vm2, %v4172_v63, 0.0  ;;  %v3064_v42 = vpop.f32.mrb[2].mxu0  ;;  %v4211_v55 = vpack.c.bf16 %v3137_v47, %v1054_v50  ;;  %v3140_v52 = vpop.f32.mrb[20].mxu1 }
 0x28d   :  { %3549 = vpow2.f32 %v1169_v48  ;;  %v383_v48 = vpop.f32.mrb[3].mxu0  ;;  %3358 = vmatprep.subr.bf16.mxu0 %v3357_v35  ;;  %v1064_v60 = vpop.f32.mrb[21].mxu1 }
 0x28e   :  { %v4175_v20 = vpop.eup %3543  ;;  %v1167_v22 = vmul.f32 1.442695, %v1160_v12  ;;  %v3361_v49 = vpack.c.bf16 %v3064_v42, %v383_v48  ;;  %v3067_v21 = vpop.f32.mrb[4].mxu0  ;;  %v4213_v12 = vpack.c.bf16 %v3140_v52, %v1064_v60 }
 0x28f   :  { %v1152_v23 = vpop.xlane.xlu0 %1151  ;;  %v518_v53 = vsel %vm466_vm2, %v4175_v20, 0.0  ;;  %v393_v54 = vpop.f32.mrb[5].mxu0 }
 0x290   :  { %3551 = vpow2.f32 %v1167_v22  ;;  %v1162_v2 = vsub.f32 %v4111_v24, %v1152_v23  ;;  %510 = vadd.xlane.f32.xlu1 %v509_v0  ;;  %519 = vadd.xlane.f32.xlu0 %v518_v53  ;;  %v3365_v58 = vpack.c.bf16 %v3067_v21, %v393_v54  ;;  %v3143_v51 = vpop.f32.mrb[22].mxu1  ;;  %v2775_v23 = vld [vmem:[%s4709_s3 + $0x40] sm:$0xff]  ;;  %v2776_v0 = vld [vmem:[%s4709_s3 + $0x48] sm:$0xff] }
 0x291   :  { %3553 = vpow2.f32 %v1173_v62  ;;  %v1074_v62 = vpop.f32.mrb[23].mxu1  ;;  %v3389_v53 = vpack.c.bf16 %v2776_v0, %v2775_v23 }
 0x292   :  { %v4182_v14 = vpop.eup %3545  ;;  %v1171_v5 = vmul.f32 1.442695, %v1162_v2  ;;  %v4215_v22 = vpack.c.bf16 %v3143_v51, %v1074_v62 }
 0x293   :  { %v1158_v15 = vpop.xlane.xlu0 %1157  ;;  %v515_v57 = vsel %vm466_vm2, %v4182_v14, 0.0  ;;  %3390 = vmatprep.subr.bf16.mxu1 %v3389_v53 }
 0x294   :  { %3555 = vpow2.f32 %v1171_v5  ;;  %v1164_v27 = vsub.f32 %v4117_v1, %v1158_v15  ;;  %516 = vadd.xlane.f32.xlu1 %v515_v57  ;;  %3392 = vmatpush3.bf16.msra.mxu1 %v3389_v53  ;;  %v2796_v53 = vld [vmem:[%s4708_s2 + $0x68] sm:$0xff] }
 0x296   :  { %v4187_v26 = vpop.eup %3547  ;;  %v1175_v30 = vmul.f32 1.442695, %v1164_v27 }
 0x297   :  { %v1177_v24 = vsel %vm466_vm2, %v4187_v26, 0.0  ;;  %v4191_v61 = vpop.eup %3549 }
 0x298   :  { %3557 = vpow2.f32 %v1175_v30  ;;  %1178 = vadd.xlane.f32.xlu1 %v1177_v24  ;;  %v1183_v33 = vsel %vm466_vm2, %v4191_v61, 0.0 }
 0x29a   :  { %v4193_v59 = vpop.eup %3551 }
 0x29b   :  { %v1180_v34 = vsel %vm466_vm2, %v4193_v59, 0.0  ;;  %v4199_v1 = vpop.eup %3553 }
 0x29c   :  { %1184 = vadd.xlane.f32.xlu1 %v1183_v33  ;;  %1181 = vadd.xlane.f32.xlu0 %v1180_v34  ;;  %v1189_v37 = vsel %vm466_vm2, %v4199_v1, 0.0 }
 0x29e   :  { %v4201_v4 = vpop.eup %3555 }
 0x29f   :  { %v1186_v38 = vsel %vm466_vm2, %v4201_v4, 0.0 }
 0x2a0   :  { %1190 = vadd.xlane.f32.xlu1 %v1189_v37  ;;  %1187 = vadd.xlane.f32.xlu0 %v1186_v38 }
 0x2a2   :  { %v4207_v40 = vpop.eup %3557 }
 0x2a3   :  { %v1192_v45 = vsel %vm466_vm2, %v4207_v40, 0.0 }
 0x2a4   :  { %1193 = vadd.xlane.f32.xlu0 %v1192_v45 }
 0x2f9   :  { %v732_v2 = vpop.xlane.xlu0 %731 }
 0x2fa   :  { %3559 = vrcp.f32 %v732_v2 }
 0x2fd   :  { %v729_v5 = vpop.xlane.xlu1 %728  ;;  %v738_v15 = vpop.xlane.xlu0 %737 }
 0x2fe   :  { %3561 = vrcp.f32 %v729_v5 }
 0x2ff   :  { %3563 = vrcp.f32 %v738_v15 }
 0x304   :  { %v3560_v57 = vpop.eup %3559 }
 0x305   :  { %v752_v33 = vmul.f32 %v3560_v57, %v4124_v44 }
 0x308   :  { %v3562_v27 = vpop.eup %3561 }
 0x309   :  { %v735_v30 = vpop.xlane.xlu1 %734  ;;  %v751_v24 = vmul.f32 %v3562_v27, %v4131_v13  ;;  %v3564_v37 = vpop.eup %3563 }
 0x30a   :  { %3565 = vrcp.f32 %v735_v30  ;;  %v754_v13 = vmul.f32 %v3564_v37, %v4129_v36 }
 0x30b   :  { %3097 = vmatprep.mubr.msk.f32.mxu0 %vm466_vm2, %v751_v24 }
 0x30c   :  { %3098 = vmatmul.mubr.msk.f32.vlgmr.msra.gmra.mrb[6].mxu0 %vm466_vm2, %v752_v33 }
 0x30d   :  { %3360 = vmatpush3.bf16.msra.mxu0 %v3357_v35 }
 0x30e   :  { %3362 = vmatprep.subr.bf16.mxu0 %v3361_v49 }
 0x311   :  { %v744_v34 = vpop.xlane.xlu0 %743  ;;  %3364 = vmatpush3.bf16.msra.mxu0 %v3361_v49 }
 0x312   :  { %3366 = vmatprep.subr.bf16.mxu0 %v3365_v58  ;;  %3567 = vrcp.f32 %v744_v34 }
 0x314   :  { %v3566_v38 = vpop.eup %3565 }
 0x315   :  { %v741_v41 = vpop.xlane.xlu1 %740  ;;  %v508_v45 = vpop.xlane.xlu0 %507  ;;  %v753_v56 = vmul.f32 %v3566_v38, %v4141_v17  ;;  %3368 = vmatpush3.bf16.msra.mxu0 %v3365_v58 }
 0x316   :  { %3569 = vrcp.f32 %v741_v41  ;;  %3378 = vmatprep.subr.bf16.mxu0 %v4211_v55  ;;  %v2798_v41 = vld [vmem:[%s4708_s2 + $0x78] sm:$0xff] }
 0x317   :  { %3100 = vmatprep.mubr.msk.f32.mxu0 %vm466_vm2, %v753_v56  ;;  %3571 = vrcp.f32 %v508_v45  ;;  %v2779_v45 = vld [vmem:[%s4709_s3 + $0x60] sm:$0xff]  ;;  %v2780_v56 = vld [vmem:[%s4709_s3 + $0x68] sm:$0xff] }
 0x318   :  { %3101 = vmatmul.mubr.msk.f32.gmra.mrb[8].mxu0 %vm466_vm2, %v754_v13  ;;  %v3397_v13 = vpack.c.bf16 %v2780_v56, %v2779_v45 }
 0x319   :  { %v505_v44 = vpop.xlane.xlu1 %504  ;;  %v514_v35 = vpop.xlane.xlu0 %513 }
 0x31a   :  { %3573 = vrcp.f32 %v505_v44 }
 0x31b   :  { %3575 = vrcp.f32 %v514_v35 }
 0x31c   :  { %v3568_v48 = vpop.eup %3567 }
 0x31d   :  { %v511_v42 = vpop.xlane.xlu1 %510  ;;  %v520_v47 = vpop.xlane.xlu0 %519  ;;  %v756_v21 = vmul.f32 %v3568_v48, %v4148_v28 }
 0x31e   :  { %3577 = vrcp.f32 %v511_v42  ;;  %v2774_v42 = vld [vmem:[%s4710_s4] ss:$0 sm:$0xff] }
 0x31f   :  { %3579 = vrcp.f32 %v520_v47 }
 0x320   :  { %v3570_v17 = vpop.eup %3569 }
 0x321   :  { %v517_v49 = vpop.xlane.xlu1 %516  ;;  %v755_v36 = vmul.f32 %v3570_v17, %v4155_v32  ;;  %v3572_v50 = vpop.eup %3571  ;;  %v2781_v17 = vld [vmem:[%s4709_s3 + $0x70] sm:$0xff] }
 0x322   :  { %3581 = vrcp.f32 %v517_v49  ;;  %v528_v60 = vmul.f32 %v3572_v50, %v4152_v31  ;;  %v2795_v31 = vld [vmem:[%s4708_s2 + $0x60] sm:$0xff]  ;;  %v2782_v49 = vld [vmem:[%s4709_s3 + $0x78] sm:$0xff] }
 0x323   :  { %3103 = vmatprep.mubr.msk.f32.mxu0 %vm466_vm2, %v755_v36  ;;  %v3405_v15 = vpack.c.bf16 %v2796_v53, %v2795_v31 }
 0x324   :  { %v3574_v54 = vpop.eup %3573  ;;  %3104 = vmatmul.mubr.msk.f32.gmra.mrb[10].mxu0 %vm466_vm2, %v756_v21 }
 0x325   :  { %v1179_v58 = vpop.xlane.xlu1 %1178  ;;  %v527_v52 = vmul.f32 %v3574_v54, %v4162_v46  ;;  %v3576_v51 = vpop.eup %3575 }
 0x326   :  { %3583 = vrcp.f32 %v1179_v58  ;;  %v530_v0 = vmul.f32 %v3576_v51, %v4165_v43  ;;  %v2805_v51 = vld [vmem:[%s4708_s2 + $0x80] sm:$0xff] }
 0x327   :  { %3118 = vmatprep.mubr.msk.f32.mxu0 %vm466_vm2, %v527_v52  ;;  %v3401_v52 = vpack.c.bf16 %v2782_v49, %v2781_v17 }
 0x328   :  { %v3578_v62 = vpop.eup %3577  ;;  %3119 = vmatmul.mubr.msk.f32.vlgmr.msra.gmra.mrb[6].mxu0 %vm466_vm2, %v528_v60 }
 0x329   :  { %v1185_v32 = vpop.xlane.xlu1 %1184  ;;  %v1182_v28 = vpop.xlane.xlu0 %1181  ;;  %3380 = vmatpush3.bf16.msra.mxu0 %v4211_v55  ;;  %v529_v23 = vmul.f32 %v3578_v62, %v4172_v63  ;;  %v2806_v62 = vld [vmem:[%s4708_s2 + $0x88] sm:$0xff] }
 0x32a   :  { %3585 = vrcp.f32 %v1185_v32  ;;  %3382 = vmatprep.subr.bf16.mxu0 %v4213_v12  ;;  %v3580_v46 = vpop.eup %3579  ;;  %v3413_v31 = vpack.c.bf16 %v2806_v62, %v2805_v51 }
 0x32b   :  { %3587 = vrcp.f32 %v1182_v28  ;;  %3121 = vmatprep.mubr.msk.f32.mxu0 %vm466_vm2, %v529_v23  ;;  %v532_v5 = vmul.f32 %v3580_v46, %v4175_v20 }
 0x32c   :  { %v3582_v55 = vpop.eup %3581  ;;  %3122 = vmatmul.mubr.msk.f32.gmra.mrb[8].mxu0 %vm466_vm2, %v530_v0 }
 0x32d   :  { %v1191_v63 = vpop.xlane.xlu1 %1190  ;;  %v1188_v2 = vpop.xlane.xlu0 %1187  ;;  %3384 = vmatpush3.bf16.msra.mxu0 %v4213_v12  ;;  %v531_v43 = vmul.f32 %v3582_v55, %v4182_v14 }
 0x32e   :  { %3589 = vrcp.f32 %v1191_v63  ;;  %3386 = vmatprep.subr.bf16.mxu0 %v4215_v22 }
 0x32f   :  { %3591 = vrcp.f32 %v1188_v2  ;;  %3124 = vmatprep.mubr.msk.f32.mxu0 %vm466_vm2, %v531_v43  ;;  %v2807_v2 = vld [vmem:[%s4708_s2 + $0x90] sm:$0xff]  ;;  %v2808_v43 = vld [vmem:[%s4708_s2 + $0x98] sm:$0xff] }
 0x330   :  { %v3584_v57 = vpop.eup %3583  ;;  %3125 = vmatmul.mubr.msk.f32.gmra.mrb[10].mxu0 %vm466_vm2, %v532_v5  ;;  %v3417_v5 = vpack.c.bf16 %v2808_v43, %v2807_v2 }
 0x331   :  { %v1194_v27 = vpop.xlane.xlu0 %1193  ;;  %3388 = vmatpush3.bf16.msra.mxu0 %v4215_v22  ;;  %v1201_v30 = vmul.f32 %v3584_v57, %v4187_v26  ;;  %v2828_v57 = vld [vmem:[%s4708_s2 + $0xa8] sm:$0xff] }
 0x332   :  { %3593 = vrcp.f32 %v1194_v27  ;;  %3406 = vmatprep.subr.bf16.mxu0 %v3405_v15 }
 0x333   :  { %3156 = vmatprep.mubr.msk.f32.mxu0 %vm466_vm2, %v1201_v30  ;;  %v2829_v30 = vld [vmem:[%s4708_s2 + $0xb0] sm:$0xff] }
 0x334   :  { %v3586_v14 = vpop.eup %3585 }
 0x335   :  { %v3588_v20 = vpop.eup %3587  ;;  %v1203_v12 = vmul.f32 %v3586_v14, %v4191_v61  ;;  %v2830_v14 = vld [vmem:[%s4708_s2 + $0xb8] sm:$0xff] }
 0x336   :  { %v1202_v24 = vmul.f32 %v3588_v20, %v4193_v59  ;;  %v2777_v59 = vld [vmem:[%s4709_s3 + $0x50] sm:$0xff]  ;;  %v3449_v20 = vpack.c.bf16 %v2830_v14, %v2829_v30 }
 0x338   :  { %v3590_v33 = vpop.eup %3589  ;;  %3157 = vmatmul.mubr.msk.f32.vlgmr.msra.gmra.mrb[6].mxu0 %vm466_vm2, %v1202_v24 }
 0x339   :  { %v3592_v34 = vpop.eup %3591  ;;  %3159 = vmatprep.mubr.msk.f32.mxu0 %vm466_vm2, %v1203_v12  ;;  %v1205_v22 = vmul.f32 %v3590_v33, %v4199_v1  ;;  %3408 = vmatpush3.bf16.msra.mxu0 %v3405_v15  ;;  %v2778_v1 = vld [vmem:[%s4709_s3 + $0x58] sm:$0xff]  ;;  %v2827_v15 = vld [vmem:[%s4708_s2 + $0xa0] sm:$0xff] }
 0x33a   :  { %v1204_v26 = vmul.f32 %v3592_v34, %v4201_v4  ;;  %v2797_v4 = vld [vmem:[%s4708_s2 + $0x70] sm:$0xff]  ;;  %v3393_v38 = vpack.c.bf16 %v2778_v1, %v2777_v59  ;;  %v3445_v27 = vpack.c.bf16 %v2828_v57, %v2827_v15 }
 0x33c   :  { %v3594_v37 = vpop.eup %3593  ;;  %3160 = vmatmul.mubr.msk.f32.gmra.mrb[8].mxu0 %vm466_vm2, %v1204_v26  ;;  %3394 = vmatprep.subr.bf16.mxu1 %v3393_v38 }
 0x33d   :  { %3162 = vmatprep.mubr.msk.f32.mxu0 %vm466_vm2, %v1205_v22  ;;  %v1206_v61 = vmul.f32 %v3594_v37, %v4207_v40  ;;  %v3409_v40 = vpack.c.bf16 %v2798_v41, %v2797_v4  ;;  %3396 = vmatpush3.bf16.msra.mxu1 %v3393_v38 }
 0x33e   :  { %3398 = vmatprep.subr.bf16.mxu1 %v3397_v13 }
 0x33f   :  { %3410 = vmatprep.subr.bf16.mxu0 %v3409_v40 }
 0x340   :  { %3163 = vmatmul.mubr.msk.f32.gmra.mrb[10].mxu0 %vm466_vm2, %v1206_v61 }
 0x341   :  { %3412 = vmatpush3.bf16.msra.mxu0 %v3409_v40 }
 0x40b   :  { %v3158_v44 = vpop.f32.mrb[6].mxu0 }
 0x40c   :  { %v1327_v35 = vmul.f32 0.33333334, %v3158_v44  ;;  %v1291_v47 = vpop.f32.mrb[7].mxu0 }
 0x40d   :  { %v1326_v48 = vmul.f32 0.33333334, %v1291_v47 }
 0x40e   :  { %v1340_v50 = vadd.f32 %v2774_v42, %v1327_v35 }
 0x40f   :  { %v1339_v36 = vadd.f32 %v2774_v42, %v1326_v48  ;;  %v3161_v21 = vpop.f32.mrb[8].mxu0 }
 0x410   :  { %v1329_v54 = vmul.f32 0.33333334, %v3161_v21  ;;  %v1301_v58 = vpop.f32.mrb[9].mxu0 }
 0x411   :  { %v1328_v60 = vmul.f32 0.33333334, %v1301_v58  ;;  %3173 = vmatprep.mubr.msk.f32.mxu1 %vm62_vm0, %v1339_v36  ;;  %3207 = vmatprep.mubr.msk.f32.mxu0 %vm62_vm0, %v1339_v36 }
 0x412   :  { %3174 = vmatmul.mubr.msk.f32.vlgmr.msra.gmra.mrb[24].mxu1 %vm62_vm0, %v1340_v50  ;;  %3208 = vmatmul.mubr.msk.f32.vlgmr.msra.gmra.mrb[12].mxu0 %vm62_vm0, %v1340_v50  ;;  %v1342_v23 = vadd.f32 %v2774_v42, %v1329_v54 }
 0x413   :  { %v1341_v32 = vadd.f32 %v2774_v42, %v1328_v60  ;;  %v3164_v28 = vpop.f32.mrb[10].mxu0  ;;  %3400 = vmatpush3.bf16.msra.mxu1 %v3397_v13 }
 0x414   :  { %v1331_v0 = vmul.f32 0.33333334, %v3164_v28  ;;  %v1311_v46 = vpop.f32.mrb[11].mxu0  ;;  %3402 = vmatprep.subr.bf16.mxu1 %v3401_v52 }
 0x415   :  { %v1330_v53 = vmul.f32 0.33333334, %v1311_v46  ;;  %3176 = vmatprep.mubr.msk.f32.mxu1 %vm62_vm0, %v1341_v32  ;;  %3210 = vmatprep.mubr.msk.f32.mxu0 %vm62_vm0, %v1341_v32 }
 0x416   :  { %3177 = vmatmul.mubr.msk.f32.gmra.mrb[26].mxu1 %vm62_vm0, %v1342_v23  ;;  %3211 = vmatmul.mubr.msk.f32.gmra.mrb[14].mxu0 %vm62_vm0, %v1342_v23  ;;  %v1344_v63 = vadd.f32 %v2774_v42, %v1331_v0 }
 0x417   :  { %v1343_v55 = vadd.f32 %v2774_v42, %v1330_v53  ;;  %3404 = vmatpush3.bf16.msra.mxu1 %v3401_v52 }
 0x418   :  { %3414 = vmatprep.subr.bf16.mxu1 %v3413_v31 }
 0x419   :  { %3179 = vmatprep.mubr.msk.f32.mxu1 %vm62_vm0, %v1343_v55  ;;  %3213 = vmatprep.mubr.msk.f32.mxu0 %vm62_vm0, %v1343_v55 }
 0x41a   :  { %3180 = vmatmul.mubr.msk.f32.gmra.mrb[28].mxu1 %vm62_vm0, %v1344_v63  ;;  %3214 = vmatmul.mubr.msk.f32.gmra.mrb[16].mxu0 %vm62_vm0, %v1344_v63 }
 0x41b   :  { %3190 = vmatprep.mubr.msk.f32.mxu1 %vm62_vm0, %v1339_v36 }
 0x41e   :  { %3191 = vmatmul.mubr.msk.f32.vlgmr.msra.gmra.mrb[30].mxu1 %vm62_vm0, %v1340_v50 }
 0x41f   :  { %3193 = vmatprep.mubr.msk.f32.mxu1 %vm62_vm0, %v1341_v32  ;;  %3416 = vmatpush3.bf16.msra.mxu1 %v3413_v31 }
 0x420   :  { %3418 = vmatprep.subr.bf16.mxu1 %v3417_v5 }
 0x422   :  { %3194 = vmatmul.mubr.msk.f32.gmra.mrb[32].mxu1 %vm62_vm0, %v1342_v23 }
 0x423   :  { %3196 = vmatprep.mubr.msk.f32.mxu1 %vm62_vm0, %v1343_v55  ;;  %3420 = vmatpush3.bf16.msra.mxu1 %v3417_v5 }
 0x424   :  { %3446 = vmatprep.subr.bf16.mxu1 %v3445_v27 }
 0x426   :  { %3197 = vmatmul.mubr.msk.f32.gmra.mrb[34].mxu1 %vm62_vm0, %v1344_v63 }
 0x427   :  { %3224 = vmatprep.mubr.msk.f32.mxu1 %vm62_vm0, %v1339_v36 }
 0x42a   :  { %3225 = vmatmul.mubr.msk.f32.vlgmr.msra.gmra.mrb[36].mxu1 %vm62_vm0, %v1340_v50 }
 0x42b   :  { %3227 = vmatprep.mubr.msk.f32.mxu1 %vm62_vm0, %v1341_v32  ;;  %3448 = vmatpush3.bf16.msra.mxu1 %v3445_v27 }
 0x42c   :  { %3450 = vmatprep.subr.bf16.mxu1 %v3449_v20 }
 0x42e   :  { %3228 = vmatmul.mubr.msk.f32.gmra.mrb[38].mxu1 %vm62_vm0, %v1342_v23 }
 0x42f   :  { %3230 = vmatprep.mubr.msk.f32.mxu1 %vm62_vm0, %v1343_v55  ;;  %3452 = vmatpush3.bf16.msra.mxu1 %v3449_v20 }
 0x432   :  { %3231 = vmatmul.mubr.msk.f32.gmra.mrb[40].mxu1 %vm62_vm0, %v1344_v63 }
 0x433   :  { %3283 = vmatprep.mubr.msk.f32.mxu1 %vm62_vm0, %v1339_v36 }
 0x436   :  { %3284 = vmatmul.mubr.msk.f32.vlgmr.msra.gmra.mrb[42].mxu1 %vm62_vm0, %v1340_v50 }
 0x437   :  { %3286 = vmatprep.mubr.msk.f32.mxu1 %vm62_vm0, %v1341_v32 }
 0x43a   :  { %3287 = vmatmul.mubr.msk.f32.gmra.mrb[44].mxu1 %vm62_vm0, %v1342_v23 }
 0x43b   :  { %3289 = vmatprep.mubr.msk.f32.mxu1 %vm62_vm0, %v1343_v55 }
 0x43e   :  { %3290 = vmatmul.mubr.msk.f32.gmra.mrb[46].mxu1 %vm62_vm0, %v1344_v63 }
 0x4e5   :  { %v4352_v12 = vpop.f32.mrb[24].mxu1  ;;  %v3209_v24 = vpop.f32.mrb[12].mxu0 }
 0x4e6   :  { %v4354_v33 = vpop.f32.mrb[25].mxu1  ;;  %v1666_v34 = vpop.f32.mrb[13].mxu0 }
 0x4e7   :  { %v4356_v22 = vpack.c.bf16 %v3209_v24, %v1666_v34 }
 0x4e9   :  { %v4358_v26 = vpop.f32.mrb[26].mxu1  ;;  %v3212_v37 = vpop.f32.mrb[14].mxu0 }
 0x4ea   :  { %v4360_v61 = vpop.f32.mrb[27].mxu1  ;;  %v1676_v59 = vpop.f32.mrb[15].mxu0 }
 0x4eb   :  { %v4362_v1 = vpack.c.bf16 %v3212_v37, %v1676_v59 }
 0x4ed   :  { %v4364_v4 = vpop.f32.mrb[28].mxu1  ;;  %v3215_v38 = vpop.f32.mrb[16].mxu0 }
 0x4ee   :  { %v4366_v41 = vpop.f32.mrb[29].mxu1  ;;  %v1686_v40 = vpop.f32.mrb[17].mxu0 }
 0x4ef   :  { %v4368_v45 = vpack.c.bf16 %v3215_v38, %v1686_v40 }
 0x4f1   :  { %v3192_v56 = vpop.f32.mrb[30].mxu1 }
 0x4f2   :  { %1702 = vperm.xlu1 %3507, %v3192_v56   ;;  %1930 = vperm.xlu0 %3509, %v3192_v56   ;;  %v1534_v13 = vpop.f32.mrb[31].mxu1 }
 0x4f5   :  { %v3195_v44 = vpop.f32.mrb[32].mxu1 }
 0x4f6   :  { %3511 = vset.pattern.permute.xlu1 %v3718_v18  ;;  %3510 = vset.pattern.permute.xlu0 %v3720_v29  ;;  %v1544_v35 = vpop.f32.mrb[33].mxu1 }
 0x4f7   :  { %2380 = vperm.xlu0 %3510, %v3192_v56   ;;  %1926 = vperm.xlu1 %3511, %v1534_v13  }
 0x4f9   :  { %v3198_v42 = vpop.f32.mrb[34].mxu1 }
 0x4fa   :  { %v1554_v47 = vpop.f32.mrb[35].mxu1 }
 0x4fb   :  { %3521 = vset.pattern.permute.xlu0 %v3719_v19  ;;  %3512 = vset.pattern.permute.xlu1 %v3719_v19 }
 0x4fc   :  { %1697 = vperm.xlu1 %3512, %v1534_v13   ;;  %1717 = vperm.xlu0 %3521, %v1554_v47  }
 0x4fd   :  { %v3226_v48 = vpop.f32.mrb[36].mxu1 }
 0x4fe   :  { %v1896_v17 = vpop.f32.mrb[37].mxu1 }
 0x4ff   :  { %v3421_v49 = vpack.c.bf16 %v3226_v48, %v1896_v17 }
 0x500   :  { %3513 = vset.pattern.permute.xlu1 %v3720_v29  ;;  %3522 = vset.pattern.permute.xlu0 %v3720_v29 }
 0x501   :  { %2376 = vperm.xlu1 %3513, %v1534_v13   ;;  %2384 = vperm.xlu0 %3522, %v1544_v35   ;;  %v3229_v36 = vpop.f32.mrb[38].mxu1 }
 0x502   :  { %3422 = vmatprep.subr.bf16.mxu0 %v3421_v49  ;;  %v1906_v21 = vpop.f32.mrb[39].mxu1 }
 0x503   :  { %v3425_v50 = vpack.c.bf16 %v3229_v36, %v1906_v21  ;;  %3424 = vmatpush3.bf16.msra.mxu0 %v3421_v49 }
 0x505   :  { %3514 = vset.pattern.permute.xlu1 %v3718_v18  ;;  %2388 = vperm.xlu0 %3522, %v3195_v44   ;;  %v3232_v54 = vpop.f32.mrb[40].mxu1 }
 0x506   :  { %3426 = vmatprep.subr.bf16.mxu0 %v3425_v50  ;;  %1938 = vperm.xlu1 %3514, %v3195_v44   ;;  %v1916_v58 = vpop.f32.mrb[41].mxu1 }
 0x507   :  { %v3429_v52 = vpack.c.bf16 %v3232_v54, %v1916_v58  ;;  %3428 = vmatpush3.bf16.msra.mxu0 %v3425_v50 }
 0x509   :  { %2396 = vperm.xlu0 %3522, %v3198_v42   ;;  %3430 = vmatprep.subr.bf16.mxu0 %v3429_v52  ;;  %v3285_v60 = vpop.f32.mrb[42].mxu1 }
 0x50a   :  { %3515 = vset.pattern.permute.xlu1 %v3719_v19  ;;  %v2346_v29 = vpop.f32.mrb[43].mxu1 }
 0x50b   :  { %3432 = vmatpush3.bf16.msra.mxu0 %v3429_v52  ;;  %v4378_v51 = vpack.c.bf16 %v3285_v60, %v2346_v29  ;;  %1712 = vperm.xlu1 %3515, %v3195_v44  }
 0x50c   :  { %3434 = vmatprep.subr.bf16.mxu0 %v4356_v22 }
 0x50d   :  { %2392 = vperm.xlu0 %3522, %v1554_v47   ;;  %v3288_v62 = vpop.f32.mrb[44].mxu1 }
 0x50e   :  { %v2356_v32 = vpop.f32.mrb[45].mxu1 }
 0x50f   :  { %v4381_v28 = vpack.c.bf16 %v3288_v62, %v2356_v32  ;;  %3516 = vset.pattern.permute.xlu1 %v3718_v18 }
 0x510   :  { %1934 = vperm.xlu1 %3516, %v1544_v35  }
 0x511   :  { %v3291_v23 = vpop.f32.mrb[46].mxu1 }
 0x512   :  { %v2366_v0 = vpop.f32.mrb[47].mxu1 }
 0x513   :  { %v4384_v46 = vpack.c.bf16 %v3291_v23, %v2366_v0 }
 0x514   :  { %3517 = vset.pattern.permute.xlu1 %v3719_v19 }
 0x515   :  { %1707 = vperm.xlu1 %3517, %v1544_v35  }
 0x519   :  { %3518 = vset.pattern.permute.xlu1 %v3718_v18 }
 0x51a   :  { %1946 = vperm.xlu1 %3518, %v3198_v42  }
 0x51e   :  { %3519 = vset.pattern.permute.xlu1 %v3719_v19 }
 0x51f   :  { %1722 = vperm.xlu1 %3519, %v3198_v42  }
 0x523   :  { %3520 = vset.pattern.permute.xlu1 %v3718_v18 }
 0x524   :  { %1942 = vperm.xlu1 %3520, %v1554_v47  }
 0x54d   :  { %1563 = vxpose.xlu1.b32.start [1/6] (short) (narrow) %v4354_v33, 8 }
 0x551   :  { %1564 = vxpose.xlu1.b32.cont [2/6] (short) (narrow) %v4352_v12, 8 }
 0x555   :  { %1565 = vxpose.xlu1.b32.cont [3/6] (short) (narrow) %v4360_v61, 8 }
 0x559   :  { %1566 = vxpose.xlu1.b32.cont [4/6] (short) (narrow) %v4358_v26, 8 }
 0x55d   :  { %1567 = vxpose.xlu1.b32.cont [5/6] (short) (narrow) %v4366_v41, 8 }
 0x561   :  { %1568 = vxpose.xlu1.b32.end [6/6] (short) (narrow) %v4364_v4, 8 }
 0x571   :  { %v4396_v31 = vpop.permute.xlu1 %1702  ;;  %v1931_v2 = vpop.permute.xlu0 %1930 }
 0x576   :  { %v1927_v53 = vpop.permute.xlu1 %1926  ;;  %v4404_v5 = vpop.permute.xlu0 %2380 }
 0x57b   :  { %v4398_v19 = vpop.permute.xlu1 %1697  ;;  %v4408_v57 = vpop.permute.xlu0 %1717 }
 0x580   :  { %v4400_v55 = vpop.permute.xlu1 %2376  ;;  %v2385_v30 = vpop.permute.xlu0 %2384 }
 0x584   :  { %v4412_v20 = vpop.permute.xlu0 %2388 }
 0x585   :  { %v1939_v18 = vpop.permute.xlu1 %1938 }
 0x588   :  { %v4414_v24 = vpop.permute.xlu0 %2396 }
 0x58a   :  { %v4402_v63 = vpop.permute.xlu1 %1712 }
 0x58c   :  { %v2393_v37 = vpop.permute.xlu0 %2392 }
 0x58f   :  { %v1935_v43 = vpop.permute.xlu1 %1934 }
 0x594   :  { %v4406_v15 = vpop.permute.xlu1 %1707 }
 0x599   :  { %v1947_v27 = vpop.permute.xlu1 %1946 }
 0x59e   :  { %v4410_v14 = vpop.permute.xlu1 %1722 }
 0x5a3   :  { %v1943_v12 = vpop.permute.xlu1 %1942 }
 0x5cd   :  { %v1579_v33 = vpop.trf.xlu1 }
 0x5ce   :  { %v1952_v34 = vrot.slane %v1579_v33, %v659_v7  ;;  %v4420_v26 = vrot.slane %v1579_v33, %v1109_v8  ;;  %v1728_v52 = vrot.slane %v1579_v33, %v434_v6 }
 0x5d0   :  { %v1957_v61 = vadd.f32 %v1952_v34, %v1943_v12  ;;  %v1954_v59 = vadd.f32 %v1952_v34, %v1931_v2  ;;  %v2405_v4 = vadd.f32 %v4420_v26, %v2385_v30  ;;  %v1953_v38 = vadd.f32 %v1952_v34, %v1927_v53 }
 0x5d1   :  { %v2407_v41 = vadd.f32 %v4420_v26, %v2393_v37  ;;  %v1956_v40 = vadd.f32 %v1952_v34, %v1939_v18  ;;  %v1955_v56 = vadd.f32 %v1952_v34, %v1935_v43  ;;  %v1958_v62 = vadd.f32 %v1952_v34, %v1947_v27 }
 0x5d2   :  { %vm1963_vm8 = vcmp.gt.f32.partialorder %v1957_v61, 0.0  ;;  %v1969_v13 = vmul.f32 0.2, %v1957_v61  ;;  %vm1960_vm9 = vcmp.gt.f32.partialorder %v1954_v59, 0.0  ;;  %v1966_v44 = vmul.f32 0.2, %v1954_v59 }
 0x5d3   :  { %vm2411_vm10 = vcmp.gt.f32.partialorder %v2405_v4, 0.0  ;;  %v2417_v7 = vmul.f32 0.2, %v2405_v4  ;;  %vm1959_vm11 = vcmp.gt.f32.partialorder %v1953_v38, 0.0  ;;  %v1965_v35 = vmul.f32 0.2, %v1953_v38 }
 0x5d4   :  { %v1975_v8 = vsel %vm1963_vm8, %v1957_v61, %v1969_v13  ;;  %v1972_v42 = vsel %vm1960_vm9, %v1954_v59, %v1966_v44  ;;  %vm2413_vm13 = vcmp.gt.f32.partialorder %v2407_v41, 0.0  ;;  %v2419_v47 = vmul.f32 0.2, %v2407_v41 }
 0x5d5   :  { %v4426_v48 = vsel %vm45_vm12, %v1975_v8, -1e+30  ;;  %v4430_v17 = vsel %vm42_vm3, %v1972_v42, -1e+30  ;;  %v2423_v49 = vsel %vm2411_vm10, %v2405_v4, %v2417_v7  ;;  %v1971_v36 = vsel %vm1959_vm11, %v1953_v38, %v1965_v35 }
 0x5d6   :  { %v1995_v21 = vsel %vm466_vm2, %v4426_v48, -inf  ;;  %v1986_v50 = vsel %vm466_vm2, %v4430_v17, -inf  ;;  %v4438_v54 = vsel %vm43_vm4, %v2423_v49, -1e+30  ;;  %v4442_v58 = vsel %vm41_vm5, %v1971_v36, -1e+30 }
 0x5d7   :  { %1996 = vmax.xlane.f32.xlu1 %v1995_v21  ;;  %1987 = vmax.xlane.f32.xlu0 %v1986_v50  ;;  %vm1962_vm14 = vcmp.gt.f32.partialorder %v1956_v40, 0.0  ;;  %v2425_v60 = vsel %vm2413_vm13, %v2407_v41, %v2419_v47  ;;  %v1968_v29 = vmul.f32 0.2, %v1956_v40  ;;  %vm1961_vm15 = vcmp.gt.f32.partialorder %v1955_v56, 0.0 }
 0x5d8   :  { %v1967_v32 = vmul.f32 0.2, %v1955_v56  ;;  %v2439_v23 = vsel %vm466_vm2, %v4438_v54, -inf  ;;  %v1983_v0 = vsel %vm466_vm2, %v4442_v58, -inf  ;;  %v4452_v18 = vsel %vm45_vm12, %v2425_v60, -1e+30 }
 0x5d9   :  { %v1974_v53 = vsel %vm1962_vm14, %v1956_v40, %v1968_v29  ;;  %v1970_v2 = vmul.f32 0.2, %v1958_v62  ;;  %v1729_v43 = vadd.f32 %v1728_v52, %v4398_v19  ;;  %vm1964_vm6 = vcmp.gt.f32.partialorder %v1958_v62, 0.0 }
 0x5da   :  { %v4456_v3 = vsel %vm44_vm1, %v1974_v53, -1e+30  ;;  %v1973_v6 = vsel %vm1961_vm15, %v1955_v56, %v1967_v32  ;;  %v2445_v27 = vsel %vm466_vm2, %v4452_v18, -inf  ;;  %v1730_v37 = vadd.f32 %v1728_v52, %v4396_v31 }
 0x5db   :  { %2440 = vmax.xlane.f32.xlu1 %v2439_v23  ;;  %1984 = vmax.xlane.f32.xlu0 %v1983_v0  ;;  %v1992_v30 = vsel %vm466_vm2, %v4456_v3, -inf  ;;  %v4465_v12 = vsel %vm43_vm4, %v1973_v6, -1e+30  ;;  %v1976_v33 = vsel %vm1964_vm6, %v1958_v62, %v1970_v2  ;;  %v1741_v34 = vmul.f32 0.2, %v1729_v43 }
 0x5dc   :  { %vm1735_vm8 = vcmp.gt.f32.partialorder %v1729_v43, 0.0  ;;  %v1989_v19 = vsel %vm466_vm2, %v4465_v12, -inf  ;;  %v4472_v61 = vsel %vm46_vm7, %v1976_v33, -1e+30  ;;  %v1742_v4 = vmul.f32 0.2, %v1730_v37 }
 0x5dd   :  { %v1747_v59 = vsel %vm1735_vm8, %v1729_v43, %v1741_v34  ;;  %v1731_v38 = vadd.f32 %v1728_v52, %v4406_v15  ;;  %vm1736_vm9 = vcmp.gt.f32.partialorder %v1730_v37, 0.0  ;;  %v1998_v41 = vsel %vm466_vm2, %v4472_v61, -inf }
 0x5de   :  { %v4479_v31 = vsel %vm41_vm5, %v1747_v59, -1e+30  ;;  %v1748_v40 = vsel %vm1736_vm9, %v1730_v37, %v1742_v4  ;;  %v1732_v13 = vadd.f32 %v1728_v52, %v4402_v63  ;;  %v1734_v8 = vadd.f32 %v1728_v52, %v4410_v14 }
 0x5df   :  { %2446 = vmax.xlane.f32.xlu1 %v2445_v27  ;;  %1993 = vmax.xlane.f32.xlu0 %v1992_v30  ;;  %v1743_v56 = vmul.f32 0.2, %v1731_v38  ;;  %vm1737_vm10 = vcmp.gt.f32.partialorder %v1731_v38, 0.0  ;;  %v1759_v44 = vsel %vm466_vm2, %v4479_v31, -inf  ;;  %v4486_v15 = vsel %vm42_vm3, %v1748_v40, -1e+30 }
 0x5e0   :  { %v1744_v35 = vmul.f32 0.2, %v1732_v13  ;;  %vm1738_vm11 = vcmp.gt.f32.partialorder %v1732_v13, 0.0  ;;  %v1762_v42 = vsel %vm466_vm2, %v4486_v15, -inf  ;;  %v1746_v49 = vmul.f32 0.2, %v1734_v8 }
 0x5e1   :  { %v1749_v7 = vsel %vm1737_vm10, %v1731_v38, %v1743_v56  ;;  %v1733_v36 = vadd.f32 %v1728_v52, %v4408_v57  ;;  %vm1740_vm13 = vcmp.gt.f32.partialorder %v1734_v8, 0.0  ;;  %v2403_v11 = vadd.f32 %v4420_v26, %v4400_v55 }
 0x5e2   :  { %v4493_v63 = vsel %vm43_vm4, %v1749_v7, -1e+30  ;;  %v1750_v47 = vsel %vm1738_vm11, %v1732_v13, %v1744_v35  ;;  %v1752_v50 = vsel %vm1740_vm13, %v1734_v8, %v1746_v49  ;;  %v2404_v32 = vadd.f32 %v4420_v26, %v4404_v5 }
 0x5e3   :  { %1990 = vmax.xlane.f32.xlu0 %v1989_v19  ;;  %v1765_v21 = vsel %vm466_vm2, %v4493_v63, -inf  ;;  %v4500_v14 = vsel %vm44_vm1, %v1750_v47, -1e+30  ;;  %v1745_v60 = vmul.f32 0.2, %v1733_v36  ;;  %vm1739_vm4 = vcmp.gt.f32.partialorder %v1733_v36, 0.0 }
 0x5e4   :  { %v1768_v29 = vsel %vm466_vm2, %v4500_v14, -inf  ;;  %v4508_v57 = vsel %vm46_vm7, %v1752_v50, -1e+30  ;;  %v2415_v62 = vmul.f32 0.2, %v2403_v11  ;;  %vm2409_vm14 = vcmp.gt.f32.partialorder %v2403_v11, 0.0 }
 0x5e5   :  { %v1751_v52 = vsel %vm1739_vm4, %v1733_v36, %v1745_v60  ;;  %v1774_v23 = vsel %vm466_vm2, %v4508_v57, -inf  ;;  %v2416_v53 = vmul.f32 0.2, %v2404_v32  ;;  %v2406_v6 = vadd.f32 %v4420_v26, %v4412_v20 }
 0x5e6   :  { %v4516_v55 = vsel %vm45_vm12, %v1751_v52, -1e+30  ;;  %v2421_v0 = vsel %vm2409_vm14, %v2403_v11, %v2415_v62  ;;  %vm2410_vm15 = vcmp.gt.f32.partialorder %v2404_v32, 0.0  ;;  %v2408_v39 = vadd.f32 %v4420_v26, %v4414_v24 }
 0x5e7   :  { %1999 = vmax.xlane.f32.xlu0 %v1998_v41  ;;  %v1771_v2 = vsel %vm466_vm2, %v4516_v55, -inf  ;;  %v4524_v5 = vsel %vm41_vm5, %v2421_v0, -1e+30  ;;  %v2422_v43 = vsel %vm2410_vm15, %v2404_v32, %v2416_v53  ;;  %v2418_v27 = vmul.f32 0.2, %v2406_v6 }
 0x5e8   :  { %vm2412_vm12 = vcmp.gt.f32.partialorder %v2406_v6, 0.0  ;;  %v2433_v30 = vsel %vm466_vm2, %v4524_v5, -inf  ;;  %v4532_v20 = vsel %vm42_vm3, %v2422_v43, -1e+30  ;;  %v2420_v34 = vmul.f32 0.2, %v2408_v39 }
 0x5e9   :  { %v2424_v33 = vsel %vm2412_vm12, %v2406_v6, %v2418_v27  ;;  %vm2414_vm6 = vcmp.gt.f32.partialorder %v2408_v39, 0.0  ;;  %v2436_v16 = vsel %vm466_vm2, %v4532_v20, -inf  ;;  %vm2692_vm3 = vcmask 1044484  }
 0x5ea   :  { %v4538_v37 = vsel %vm44_vm1, %v2424_v33, -1e+30  ;;  %v2426_v24 = vsel %vm2414_vm6, %v2408_v39, %v2420_v34  ;;  %vm2686_vm1 = vcmask 1041409   ;;  %vm2694_vm5 = vcmask 1045509  }
 0x5eb   :  { %1760 = vmax.xlane.f32.xlu0 %v1759_v44  ;;  %v2442_v26 = vsel %vm466_vm2, %v4538_v37, -inf  ;;  %v4544_v10 = vsel %vm46_vm7, %v2426_v24, -1e+30  ;;  %vm2697_vm7 = vcmask 259072  }
 0x5ec   :  { %v2448_v19 = vsel %vm466_vm2, %v4544_v10, -inf }
 0x5ef   :  { %1763 = vmax.xlane.f32.xlu0 %v1762_v42 }
 0x5f3   :  { %1766 = vmax.xlane.f32.xlu0 %v1765_v21 }
 0x5f7   :  { %1769 = vmax.xlane.f32.xlu0 %v1768_v29 }
 0x5fb   :  { %1775 = vmax.xlane.f32.xlu0 %v1774_v23 }
 0x5ff   :  { %1772 = vmax.xlane.f32.xlu0 %v1771_v2 }
 0x603   :  { %2434 = vmax.xlane.f32.xlu0 %v2433_v30 }
 0x607   :  { %2437 = vmax.xlane.f32.xlu0 %v2436_v16 }
 0x60b   :  { %2443 = vmax.xlane.f32.xlu0 %v2442_v26 }
 0x60f   :  { %2449 = vmax.xlane.f32.xlu0 %v2448_v19 }
 0x664   :  { %v1988_v59 = vpop.xlane.xlu0 %1987  ;;  %v1997_v56 = vpop.xlane.xlu1 %1996 }
 0x665   :  { %v2002_v4 = vsub.f32 %v4430_v17, %v1988_v59  ;;  %v2005_v25 = vsub.f32 %v4426_v48, %v1997_v56 }
 0x667   :  { %v2009_v38 = vmul.f32 1.442695, %v2002_v4  ;;  %v2015_v42 = vmul.f32 1.442695, %v2005_v25 }
 0x668   :  { %v1985_v9 = vpop.xlane.xlu0 %1984  ;;  %v2441_v24 = vpop.xlane.xlu1 %2440 }
 0x669   :  { %v2001_v41 = vsub.f32 %v4442_v58, %v1985_v9  ;;  %3595 = vpow2.f32 %v2009_v38  ;;  %v2453_v9 = vsub.f32 %v4438_v54, %v2441_v24 }
 0x66b   :  { %v2007_v40 = vmul.f32 1.442695, %v2001_v41  ;;  %v2461_v25 = vmul.f32 1.442695, %v2453_v9 }
 0x66c   :  { %v1994_v13 = vpop.xlane.xlu0 %1993 }
 0x66d   :  { %v2004_v44 = vsub.f32 %v4456_v3, %v1994_v13  ;;  %3597 = vpow2.f32 %v2007_v40  ;;  %v2447_v40 = vpop.xlane.xlu1 %2446 }
 0x66f   :  { %v2013_v7 = vmul.f32 1.442695, %v2004_v44 }
 0x670   :  { %v1991_v35 = vpop.xlane.xlu0 %1990 }
 0x671   :  { %v2003_v8 = vsub.f32 %v4465_v12, %v1991_v35  ;;  %3599 = vpow2.f32 %v2013_v7 }
 0x673   :  { %v2011_v17 = vmul.f32 1.442695, %v2003_v8  ;;  %v4553_v47 = vpop.eup %3595 }
 0x674   :  { %v2000_v49 = vpop.xlane.xlu0 %1999  ;;  %v2022_v36 = vsel %vm466_vm2, %v4553_v47, 0.0 }
 0x675   :  { %3601 = vpow2.f32 %v2011_v17  ;;  %v2006_v58 = vsub.f32 %v4472_v61, %v2000_v49  ;;  %2023 = vadd.xlane.f32.xlu0 %v2022_v36 }
 0x676   :  { %3603 = vpow2.f32 %v2015_v42 }
 0x677   :  { %v2017_v3 = vmul.f32 1.442695, %v2006_v58  ;;  %v4558_v48 = vpop.eup %3597 }
 0x678   :  { %v1761_v21 = vpop.xlane.xlu0 %1760  ;;  %v2019_v50 = vsel %vm466_vm2, %v4558_v48, 0.0 }
 0x679   :  { %3605 = vpow2.f32 %v2017_v3  ;;  %v1777_v12 = vsub.f32 %v4479_v31, %v1761_v21  ;;  %2020 = vadd.xlane.f32.xlu1 %v2019_v50 }
 0x67b   :  { %v1783_v60 = vmul.f32 1.442695, %v1777_v12  ;;  %v4563_v11 = vpop.eup %3599 }
 0x67c   :  { %v1764_v61 = vpop.xlane.xlu0 %1763  ;;  %v2028_v52 = vsel %vm466_vm2, %v4563_v11, 0.0 }
 0x67d   :  { %3607 = vpow2.f32 %v1783_v60  ;;  %v1778_v29 = vsub.f32 %v4486_v15, %v1764_v61  ;;  %2029 = vadd.xlane.f32.xlu0 %v2028_v52 }
 0x67f   :  { %v4568_v62 = vpop.eup %3601  ;;  %v1785_v32 = vmul.f32 1.442695, %v1778_v29 }
 0x680   :  { %v1767_v23 = vpop.xlane.xlu0 %1766  ;;  %v2025_v31 = vsel %vm466_vm2, %v4568_v62, 0.0  ;;  %v4572_v0 = vpop.eup %3603 }
 0x681   :  { %3609 = vpow2.f32 %v1785_v32  ;;  %v1779_v53 = vsub.f32 %v4493_v63, %v1767_v23  ;;  %2026 = vadd.xlane.f32.xlu1 %v2025_v31  ;;  %v2031_v43 = vsel %vm466_vm2, %v4572_v0, 0.0 }
 0x683   :  { %v4575_v6 = vpop.eup %3605  ;;  %v1787_v15 = vmul.f32 1.442695, %v1779_v53 }
 0x684   :  { %v1770_v2 = vpop.xlane.xlu0 %1769  ;;  %v2034_v27 = vsel %vm466_vm2, %v4575_v6, 0.0 }
 0x685   :  { %3611 = vpow2.f32 %v1787_v15  ;;  %v1780_v39 = vsub.f32 %v4500_v14, %v1770_v2  ;;  %2032 = vadd.xlane.f32.xlu1 %v2031_v43  ;;  %2035 = vadd.xlane.f32.xlu0 %v2034_v27 }
 0x687   :  { %v4582_v30 = vpop.eup %3607  ;;  %v1789_v33 = vmul.f32 1.442695, %v1780_v39 }
 0x688   :  { %v1776_v63 = vpop.xlane.xlu0 %1775  ;;  %v1795_v34 = vsel %vm466_vm2, %v4582_v30, 0.0 }
 0x689   :  { %3613 = vpow2.f32 %v1789_v33  ;;  %v1782_v16 = vsub.f32 %v4508_v57, %v1776_v63  ;;  %1796 = vadd.xlane.f32.xlu1 %v1795_v34 }
 0x68b   :  { %v4587_v26 = vpop.eup %3609  ;;  %v1793_v19 = vmul.f32 1.442695, %v1782_v16 }
 0x68c   :  { %v1773_v59 = vpop.xlane.xlu0 %1772  ;;  %v1798_v14 = vsel %vm466_vm2, %v4587_v26, 0.0 }
 0x68d   :  { %3615 = vpow2.f32 %v1793_v19  ;;  %v1781_v4 = vsub.f32 %v4516_v55, %v1773_v59  ;;  %1799 = vadd.xlane.f32.xlu0 %v1798_v14  ;;  %v2455_v55 = vsub.f32 %v4452_v18, %v2447_v40 }
 0x68f   :  { %v4592_v38 = vpop.eup %3611  ;;  %v1791_v41 = vmul.f32 1.442695, %v1781_v4  ;;  %v2465_v17 = vmul.f32 1.442695, %v2455_v55 }
 0x690   :  { %v2435_v57 = vpop.xlane.xlu0 %2434  ;;  %v1801_v56 = vsel %vm466_vm2, %v4592_v38, 0.0 }
 0x691   :  { %3617 = vpow2.f32 %v1791_v41  ;;  %v2451_v13 = vsub.f32 %v4524_v5, %v2435_v57  ;;  %1802 = vadd.xlane.f32.xlu1 %v1801_v56 }
 0x693   :  { %v4598_v44 = vpop.eup %3613  ;;  %v2457_v7 = vmul.f32 1.442695, %v2451_v13 }
 0x694   :  { %v2438_v35 = vpop.xlane.xlu0 %2437  ;;  %v1804_v54 = vsel %vm466_vm2, %v4598_v44, 0.0 }
 0x695   :  { %3619 = vpow2.f32 %v2457_v7  ;;  %v2452_v8 = vsub.f32 %v4532_v20, %v2438_v35  ;;  %1805 = vadd.xlane.f32.xlu0 %v1804_v54 }
 0x696   :  { %3621 = vpow2.f32 %v2461_v25 }
 0x697   :  { %v4604_v42 = vpop.eup %3615  ;;  %v2459_v5 = vmul.f32 1.442695, %v2452_v8 }
 0x698   :  { %v2444_v49 = vpop.xlane.xlu0 %2443  ;;  %v1810_v58 = vsel %vm466_vm2, %v4604_v42, 0.0 }
 0x699   :  { %3623 = vpow2.f32 %v2459_v5  ;;  %v2454_v18 = vsub.f32 %v4538_v37, %v2444_v49  ;;  %1811 = vadd.xlane.f32.xlu0 %v1810_v58 }
 0x69a   :  { %3625 = vpow2.f32 %v2465_v17 }
 0x69b   :  { %v4609_v36 = vpop.eup %3617  ;;  %v2463_v3 = vmul.f32 1.442695, %v2454_v18 }
 0x69c   :  { %v2450_v21 = vpop.xlane.xlu0 %2449  ;;  %v1807_v20 = vsel %vm466_vm2, %v4609_v36, 0.0 }
 0x69d   :  { %3627 = vpow2.f32 %v2463_v3  ;;  %v2456_v12 = vsub.f32 %v4544_v10, %v2450_v21  ;;  %1808 = vadd.xlane.f32.xlu1 %v1807_v20 }
 0x69f   :  { %v4614_v50 = vpop.eup %3619  ;;  %v2467_v60 = vmul.f32 1.442695, %v2456_v12 }
 0x6a0   :  { %v2469_v61 = vsel %vm466_vm2, %v4614_v50, 0.0  ;;  %v4618_v37 = vpop.eup %3621 }
 0x6a1   :  { %3629 = vpow2.f32 %v2467_v60  ;;  %2470 = vadd.xlane.f32.xlu1 %v2469_v61  ;;  %v2475_v52 = vsel %vm466_vm2, %v4618_v37, 0.0 }
 0x6a3   :  { %v4620_v29 = vpop.eup %3623 }
 0x6a4   :  { %v2472_v32 = vsel %vm466_vm2, %v4620_v29, 0.0  ;;  %v4626_v10 = vpop.eup %3625 }
 0x6a5   :  { %2476 = vadd.xlane.f32.xlu1 %v2475_v52  ;;  %2473 = vadd.xlane.f32.xlu0 %v2472_v32  ;;  %v2481_v31 = vsel %vm466_vm2, %v4626_v10, 0.0 }
 0x6a7   :  { %v4628_v23 = vpop.eup %3627 }
 0x6a8   :  { %v2478_v53 = vsel %vm466_vm2, %v4628_v23, 0.0 }
 0x6a9   :  { %2482 = vadd.xlane.f32.xlu1 %v2481_v31  ;;  %2479 = vadd.xlane.f32.xlu0 %v2478_v53 }
 0x6ab   :  { %v4634_v15 = vpop.eup %3629 }
 0x6ac   :  { %v2484_v2 = vsel %vm466_vm2, %v4634_v15, 0.0 }
 0x6ad   :  { %2485 = vadd.xlane.f32.xlu0 %v2484_v2 }
 0x702   :  { %v2024_v43 = vpop.xlane.xlu0 %2023 }
 0x703   :  { %3631 = vrcp.f32 %v2024_v43 }
 0x706   :  { %v2021_v27 = vpop.xlane.xlu1 %2020 }
 0x707   :  { %3633 = vrcp.f32 %v2021_v27 }
 0x70a   :  { %v2030_v39 = vpop.xlane.xlu0 %2029 }
 0x70b   :  { %3635 = vrcp.f32 %v2030_v39 }
 0x70d   :  { %v3632_v63 = vpop.eup %3631 }
 0x70e   :  { %v2027_v33 = vpop.xlane.xlu1 %2026  ;;  %v2044_v59 = vmul.f32 %v3632_v63, %v4553_v47 }
 0x70f   :  { %3637 = vrcp.f32 %v2027_v33 }
 0x711   :  { %v3634_v34 = vpop.eup %3633 }
 0x712   :  { %v2033_v16 = vpop.xlane.xlu1 %2032  ;;  %v2036_v24 = vpop.xlane.xlu0 %2035  ;;  %v2043_v19 = vmul.f32 %v3634_v34, %v4558_v48 }
 0x713   :  { %3639 = vrcp.f32 %v2033_v16 }
 0x714   :  { %3641 = vrcp.f32 %v2036_v24  ;;  %3245 = vmatprep.mubr.msk.f32.mxu0 %vm466_vm2, %v2043_v19 }
 0x715   :  { %3246 = vmatmul.mubr.msk.f32.vlgmr.msra.gmra.mrb[18].mxu0 %vm466_vm2, %v2044_v59  ;;  %v3636_v4 = vpop.eup %3635 }
 0x716   :  { %v1797_v14 = vpop.xlane.xlu1 %1796  ;;  %3436 = vmatpush3.bf16.msra.mxu0 %v4356_v22  ;;  %v2046_v47 = vmul.f32 %v3636_v4, %v4563_v11 }
 0x717   :  { %3643 = vrcp.f32 %v1797_v14  ;;  %3438 = vmatprep.subr.bf16.mxu0 %v4362_v1 }
 0x719   :  { %v3638_v9 = vpop.eup %3637 }
 0x71a   :  { %v1800_v41 = vpop.xlane.xlu0 %1799  ;;  %v2045_v40 = vmul.f32 %v3638_v9, %v4568_v62  ;;  %3440 = vmatpush3.bf16.msra.mxu0 %v4362_v1 }
 0x71b   :  { %3645 = vrcp.f32 %v1800_v41  ;;  %3442 = vmatprep.subr.bf16.mxu0 %v4368_v45 }
 0x71c   :  { %3248 = vmatprep.mubr.msk.f32.mxu0 %vm466_vm2, %v2045_v40 }
 0x71d   :  { %v3640_v48 = vpop.eup %3639  ;;  %3249 = vmatmul.mubr.msk.f32.gmra.mrb[20].mxu0 %vm466_vm2, %v2046_v47 }
 0x71e   :  { %v3642_v22 = vpop.eup %3641  ;;  %v1803_v57 = vpop.xlane.xlu1 %1802  ;;  %v2047_v56 = vmul.f32 %v3640_v48, %v4572_v0  ;;  %3444 = vmatpush3.bf16.msra.mxu0 %v4368_v45 }
 0x71f   :  { %3647 = vrcp.f32 %v1803_v57  ;;  %v2048_v62 = vmul.f32 %v3642_v22, %v4575_v6  ;;  %3454 = vmatprep.subr.bf16.mxu0 %v4378_v51 }
 0x720   :  { %3251 = vmatprep.mubr.msk.f32.mxu0 %vm466_vm2, %v2047_v56 }
 0x721   :  { %v3644_v1 = vpop.eup %3643  ;;  %3252 = vmatmul.mubr.msk.f32.gmra.mrb[22].mxu0 %vm466_vm2, %v2048_v62 }
 0x722   :  { %v1806_v11 = vpop.xlane.xlu0 %1805  ;;  %v1819_v13 = vmul.f32 %v3644_v1, %v4582_v30 }
 0x723   :  { %3649 = vrcp.f32 %v1806_v11 }
 0x724   :  { %3266 = vmatprep.mubr.msk.f32.mxu0 %vm466_vm2, %v1819_v13 }
 0x725   :  { %v3646_v25 = vpop.eup %3645 }
 0x726   :  { %v1820_v0 = vmul.f32 %v3646_v25, %v4587_v26  ;;  %v1812_v45 = vpop.xlane.xlu0 %1811 }
 0x727   :  { %3651 = vrcp.f32 %v1812_v45 }
 0x728   :  { %3267 = vmatmul.mubr.msk.f32.vlgmr.msra.gmra.mrb[18].mxu0 %vm466_vm2, %v1820_v0 }
 0x729   :  { %v3648_v6 = vpop.eup %3647  ;;  %3456 = vmatpush3.bf16.msra.mxu0 %v4378_v51 }
 0x72a   :  { %3458 = vmatprep.subr.bf16.mxu0 %v4381_v28  ;;  %v1809_v55 = vpop.xlane.xlu1 %1808  ;;  %v1821_v7 = vmul.f32 %v3648_v6, %v4592_v38 }
 0x72b   :  { %3653 = vrcp.f32 %v1809_v55 }
 0x72c   :  { %3269 = vmatprep.mubr.msk.f32.mxu0 %vm466_vm2, %v1821_v7 }
 0x72d   :  { %v3650_v30 = vpop.eup %3649  ;;  %3460 = vmatpush3.bf16.msra.mxu0 %v4381_v28 }
 0x72e   :  { %3462 = vmatprep.subr.bf16.mxu0 %v4384_v46  ;;  %v2471_v26 = vpop.xlane.xlu1 %2470  ;;  %v1822_v35 = vmul.f32 %v3650_v30, %v4598_v44 }
 0x72f   :  { %3655 = vrcp.f32 %v2471_v26 }
 0x730   :  { %3270 = vmatmul.mubr.msk.f32.gmra.mrb[20].mxu0 %vm466_vm2, %v1822_v35 }
 0x731   :  { %3464 = vmatpush3.bf16.msra.mxu0 %v4384_v46  ;;  %v3652_v38 = vpop.eup %3651 }
 0x732   :  { %v2477_v51 = vpop.xlane.xlu1 %2476  ;;  %v2474_v54 = vpop.xlane.xlu0 %2473  ;;  %v1824_v49 = vmul.f32 %v3652_v38, %v4604_v42 }
 0x733   :  { %3657 = vrcp.f32 %v2477_v51 }
 0x734   :  { %3659 = vrcp.f32 %v2474_v54 }
 0x735   :  { %v3654_v8 = vpop.eup %3653 }
 0x736   :  { %v2483_v17 = vpop.xlane.xlu1 %2482  ;;  %v2480_v5 = vpop.xlane.xlu0 %2479  ;;  %v1823_v28 = vmul.f32 %v3654_v8, %v4609_v36 }
 0x737   :  { %3661 = vrcp.f32 %v2483_v17 }
 0x738   :  { %3663 = vrcp.f32 %v2480_v5  ;;  %3272 = vmatprep.mubr.msk.f32.mxu0 %vm466_vm2, %v1823_v28 }
 0x739   :  { %v3656_v44 = vpop.eup %3655  ;;  %3273 = vmatmul.mubr.msk.f32.gmra.mrb[22].mxu0 %vm466_vm2, %v1824_v49 }
 0x73a   :  { %v2486_v46 = vpop.xlane.xlu0 %2485  ;;  %v2493_v58 = vmul.f32 %v3656_v44, %v4614_v50 }
 0x73b   :  { %3665 = vrcp.f32 %v2486_v46 }
 0x73c   :  { %3304 = vmatprep.mubr.msk.f32.mxu0 %vm466_vm2, %v2493_v58 }
 0x73d   :  { %v3658_v18 = vpop.eup %3657 }
 0x73e   :  { %v3660_v3 = vpop.eup %3659  ;;  %v2495_v21 = vmul.f32 %v3658_v18, %v4618_v37 }
 0x73f   :  { %v2494_v36 = vmul.f32 %v3660_v3, %v4620_v29  ;;  %v2844_v29 = vld [vmem:[%s4710_s4 + $0x1] ss:$0 sm:$0xff]  ;;  %s3721_s4 = smov [#allocation5]  }
 0x740   :  { %s2705_s19 = sshll.u32 %s3721_s4, 4  ;;  %s2706_s19 = int_to_ptr.vmem [resolvable:$true] %s2705_s19 }
 0x741   :  { %v3662_v20 = vpop.eup %3661  ;;  %3305 = vmatmul.mubr.msk.f32.vlgmr.msra.gmra.mrb[18].mxu0 %vm466_vm2, %v2494_v36  ;;  %s3689_s20 = scalar_lea.vmem %s2706_s19, 128  ;;  %p3694_p9 = scmp.lt.s32.totalorder %s2706_s19, %s2706_s19 }
 0x742   :  { %v3664_v42 = vpop.eup %3663  ;;  %3307 = vmatprep.mubr.msk.f32.mxu0 %vm466_vm2, %v2495_v21  ;;  %v2497_v12 = vmul.f32 %v3662_v20, %v4626_v10  ;;  %p3690_p8 = scmp.ne.s32.totalorder %s2706_s19, %s3689_s20  ;;  %p3695_p10 = scmp.lt.s32.totalorder %s3689_s20, %s3689_s20 }
 0x743   :  { %v2496_v60 = vmul.f32 %v3664_v42, %v4628_v23 }
 0x744   :  { %p3696_p11 = por %p3695_p10, %p3694_p9 }
 0x745   :  { %v3666_v50 = vpop.eup %3665  ;;  %3308 = vmatmul.mubr.msk.f32.gmra.mrb[20].mxu0 %vm466_vm2, %v2496_v60 }
 0x746   :  { %3310 = vmatprep.mubr.msk.f32.mxu0 %vm466_vm2, %v2497_v12  ;;  %v2498_v61 = vmul.f32 %v3666_v50, %v4634_v15  ;;  %p3697_p12 = pnand %p3696_p11, %p3690_p8 }
 0x749   :  { %3311 = vmatmul.mubr.msk.f32.gmra.mrb[22].mxu0 %vm466_vm2, %v2498_v61  ;;  %vm2688_vm2 = vcmask 1042434  }
 0x814   :  { %v3306_v37 = vpop.f32.mrb[18].mxu0 }
 0x815   :  { %v2619_v52 = vmul.f32 0.33333334, %v3306_v37  ;;  %v2583_v32 = vpop.f32.mrb[19].mxu0 }
 0x816   :  { %v2618_v31 = vmul.f32 0.33333334, %v2583_v32 }
 0x817   :  { %v2633_v10 = vadd.f32 %v2844_v29, %v2619_v52 }
 0x818   :  { %v2632_v53 = vadd.f32 %v2844_v29, %v2618_v31  ;;  %v3309_v23 = vpop.f32.mrb[20].mxu0 }
 0x819   :  { %v2645_v2 = vsel %vm62_vm0, %v2633_v10, -inf  ;;  %v2621_v43 = vmul.f32 0.33333334, %v3309_v23  ;;  %v2593_v27 = vpop.f32.mrb[21].mxu0 }
 0x81a   :  { %v2646_v39 = vrot.slane %v2645_v2, 4  ;;  %v2638_v15 = vsel %vm62_vm0, %v2632_v53, -inf  ;;  %v2620_v33 = vmul.f32 0.33333334, %v2593_v27 }
 0x81b   :  { %v2639_v63 = vrot.slane %v2638_v15, 4  ;;  %v2635_v34 = vadd.f32 %v2844_v29, %v2621_v43 }
 0x81c   :  { %v2647_v16 = vmax.f32 %v2645_v2, %v2646_v39  ;;  %v2634_v24 = vadd.f32 %v2844_v29, %v2620_v33  ;;  %v3312_v19 = vpop.f32.mrb[22].mxu0 }
 0x81d   :  { %v2640_v59 = vmax.f32 %v2638_v15, %v2639_v63  ;;  %v2659_v14 = vsel %vm62_vm0, %v2635_v34, -inf  ;;  %v2623_v4 = vmul.f32 0.33333334, %v3312_v19  ;;  %v2603_v9 = vpop.f32.mrb[23].mxu0 }
 0x81e   :  { %v2648_v41 = vrot.slane %v2647_v16, 2  ;;  %v2660_v40 = vrot.slane %v2659_v14, 4  ;;  %v2652_v47 = vsel %vm62_vm0, %v2634_v24, -inf  ;;  %v2622_v48 = vmul.f32 0.33333334, %v2603_v9 }
 0x81f   :  { %v2641_v22 = vrot.slane %v2640_v59, 2  ;;  %v2653_v57 = vrot.slane %v2652_v47, 4  ;;  %v2637_v56 = vadd.f32 %v2844_v29, %v2623_v4 }
 0x820   :  { %v2649_v62 = vmax.f32 %v2647_v16, %v2648_v41  ;;  %v2661_v1 = vmax.f32 %v2659_v14, %v2660_v40  ;;  %v2636_v11 = vadd.f32 %v2844_v29, %v2622_v48 }
 0x821   :  { %v2642_v13 = vmax.f32 %v2640_v59, %v2641_v22  ;;  %v2654_v25 = vmax.f32 %v2652_v47, %v2653_v57  ;;  %v2673_v0 = vsel %vm62_vm0, %v2637_v56, -inf }
 0x822   :  { %v2650_v45 = vrot.slane %v2649_v62, 1  ;;  %v2662_v6 = vrot.slane %v2661_v1, 2  ;;  %v2674_v55 = vrot.slane %v2673_v0, 4  ;;  %v2666_v7 = vsel %vm62_vm0, %v2636_v11, -inf }
 0x823   :  { %v2643_v30 = vrot.slane %v2642_v13, 1  ;;  %v2655_v26 = vrot.slane %v2654_v25, 2  ;;  %v2667_v35 = vrot.slane %v2666_v7, 4  ;;  %vm2690_vm0 = vcmask 1043459  }
 0x824   :  { %v2651_v51 = vmax.f32 %v2649_v62, %v2650_v45  ;;  %v2663_v54 = vmax.f32 %v2661_v1, %v2662_v6  ;;  %v2675_v38 = vmax.f32 %v2673_v0, %v2674_v55 }
 0x825   :  { %v2644_v8 = vmax.f32 %v2642_v13, %v2643_v30  ;;  %v2656_v17 = vmax.f32 %v2654_v25, %v2655_v26  ;;  %v2668_v5 = vmax.f32 %v2666_v7, %v2667_v35 }
 0x826   :  { %v2664_v28 = vrot.slane %v2663_v54, 1  ;;  %v2676_v49 = vrot.slane %v2675_v38, 2 }
 0x827   :  { %v2657_v44 = vrot.slane %v2656_v17, 1  ;;  %v2669_v46 = vrot.slane %v2668_v5, 2  ;;  %v2687_v58 = vsel %vm2686_vm1, %v2651_v51, %v2644_v8 }
 0x828   :  { %v2677_v18 = vmax.f32 %v2675_v38, %v2676_v49  ;;  %v2665_v36 = vmax.f32 %v2663_v54, %v2664_v28 }
 0x829   :  { %v2658_v3 = vmax.f32 %v2656_v17, %v2657_v44  ;;  %v2670_v21 = vmax.f32 %v2668_v5, %v2669_v46 }
 0x82a   :  { %v2678_v20 = vrot.slane %v2677_v18, 1 }
 0x82b   :  { %v2671_v42 = vrot.slane %v2670_v21, 1  ;;  %v2689_v12 = vsel %vm2688_vm2, %v2658_v3, %v2687_v58 }
 0x82c   :  { %v2691_v60 = vsel %vm2690_vm0, %v2665_v36, %v2689_v12  ;;  %v2679_v61 = vmax.f32 %v2677_v18, %v2678_v20 }
 0x82d   :  { %v2672_v50 = vmax.f32 %v2670_v21, %v2671_v42 }
 0x82f   :  { %v2693_v37 = vsel %vm2692_vm3, %v2672_v50, %v2691_v60 }
 0x830   :  { %v2695_v29 = vsel %vm2694_vm5, %v2679_v61, %v2693_v37 }
 0x831   :  { %2698 = vst.msk [vmem:[#allocation5] sm:$0x3f] %vm2697_vm7, %v2695_v29 }
 0x832   :  { %3700 = shalt.err (!%p3697_p12)
}
 0x833   :  { %s3701_s23 = scalar_lea.hbm %s4711_s5, 128 }
 0x834   :  { %p3702_p13 = scmp.ne.s32.totalorder %s4711_s5, %s3701_s23  ;;  %p3705_p0 = scmp.lt.u32.totalorder %s3701_s23, %s4711_s5 }
 0x836   :  { %p3707_p1 = pnand %p3705_p0, %p3702_p13 }
 0x838   :  { %3710 = shalt.err (!%p3707_p1)
}
 0x839   :  { %2708 = dma.vmem_to_hbm [thread:$0]  %s2706_s19, 128, %s4711_s5, [#allocation4]  }
 0x83a   :  { %3713 = dma.done.wait [#allocation4], 128  }
 0x83b   :  { %3714 = vsyncadd [#allocation4], 4294967168 }
 0x83c   :  { %2712 = vsyncpa [#allocation3], 1 }
 0x83d   :  { %2713 = vsyncpa [#allocation4], 1 }

</bundles_post_ra>
